<compile_context>
chip_gen: v6e
topology: v6e:2x2x1
jax: 0.10.0
libtpu: 0.0.40
codegen_flags: <defaults>
</compile_context>

<pallas_src>
import functools

import jax
import jax.numpy as jnp
from jax import lax
from jax.experimental import pallas as pl
from jax.experimental.pallas import tpu as pltpu


def _vmem_limit(*block_bytes):
    """Scoped-VMEM request: 2x (double buffering) the live blocks + slack."""
    need = 2 * sum(block_bytes) + (2 << 20)
    return int(min(max(need, 4 << 20), 32 << 20))   # stays well under v7x's 64 MiB


# ---------------------------------------------------------------------------
# Kernel 1: fused GroupNorm + ReLU.  One grid step per batch sample; block is
# (C, D*H*W) so channels sit on sublanes and spatial on lanes (NCDHW native).
# ---------------------------------------------------------------------------
def _gn_relu_kernel(x_ref, gamma_ref, beta_ref, o_ref, *, num_groups, eps):
    C, S = x_ref.shape
    cpg = C // num_groups
    inv_n = 1.0 / float(cpg * S)
    for g in range(num_groups):                       # static unroll (8 groups)
        lo, hi = g * cpg, (g + 1) * cpg
        blk = x_ref[lo:hi, :].astype(jnp.float32)     # (cpg, S)
        row_sum = jnp.sum(blk, axis=1, keepdims=True)          # lane reduce
        mean = jnp.sum(row_sum, axis=0, keepdims=True) * inv_n  # (1, 1)
        cen = blk - mean
        row_sq = jnp.sum(cen * cen, axis=1, keepdims=True)
        var = jnp.sum(row_sq, axis=0, keepdims=True) * inv_n
        y = cen * lax.rsqrt(var + eps)
        y = y * gamma_ref[lo:hi, :] + beta_ref[lo:hi, :]
        o_ref[lo:hi, :] = jnp.maximum(y, 0.0).astype(o_ref.dtype)


def groupnorm_relu(x_ncs, gamma, beta, *, num_groups=8, eps=1e-5):
    """x_ncs: (N, C, S) -> GroupNorm(num_groups) + ReLU, same shape."""
    N, C, S = x_ncs.shape
    return pl.pallas_call(
        functools.partial(_gn_relu_kernel, num_groups=num_groups, eps=eps),
        out_shape=jax.ShapeDtypeStruct((N, C, S), x_ncs.dtype),
        grid_spec=pltpu.PrefetchScalarGridSpec(
            num_scalar_prefetch=0,
            grid=(N,),
            in_specs=[
                pl.BlockSpec((None, C, S), lambda n: (n, 0, 0)),
                pl.BlockSpec((C, 1), lambda n: (0, 0)),
                pl.BlockSpec((C, 1), lambda n: (0, 0)),
            ],
            out_specs=pl.BlockSpec((None, C, S), lambda n: (n, 0, 0)),
        ),
        compiler_params=pltpu.CompilerParams(
            dimension_semantics=("parallel",),
            vmem_limit_bytes=_vmem_limit(C * S * 4, C * S * 4),
        ),
    )(x_ncs, gamma.reshape(C, 1), beta.reshape(C, 1))


# ---------------------------------------------------------------------------
# Kernel 2: per-sample channel matmul in native (C, spatial) layout:
#   out[n] = W(Cout, K) @ x[n](K, S) + b.
# Used for the 1x1x1 conv (up0.conv1) and for the im2col'd 3x3x3 conv1.
# Spatial axis stays the last (lane) dimension -> lane-dense loads/stores.
# ---------------------------------------------------------------------------
def _channel_matmul_kernel(x_ref, w_ref, b_ref, o_ref, *, relu):
    acc = jnp.dot(w_ref[...], x_ref[...].astype(jnp.float32),
                  preferred_element_type=jnp.float32)
    acc = acc + b_ref[...]
    if relu:
        acc = jnp.maximum(acc, 0.0)
    o_ref[...] = acc.astype(o_ref.dtype)


def channel_matmul(x_nks, w, b, *, relu=False, spatial_tile=2048):
    """x_nks: (N, K, S), w: (Cout, K), b: (Cout,) -> (N, Cout, S)."""
    N, K, S = x_nks.shape
    Cout = w.shape[0]
    ts = S if S <= spatial_tile else spatial_tile     # large lane-dense tiles
    grid = (N, pl.cdiv(S, ts))                        # masked tail, no assert
    return pl.pallas_call(
        functools.partial(_channel_matmul_kernel, relu=relu),
        out_shape=jax.ShapeDtypeStruct((N, Cout, S), x_nks.dtype),
        grid_spec=pltpu.PrefetchScalarGridSpec(
            num_scalar_prefetch=0,
            grid=grid,
            in_specs=[
                pl.BlockSpec((None, K, ts), lambda n, s: (n, 0, s)),
                pl.BlockSpec((Cout, K), lambda n, s: (0, 0)),
                pl.BlockSpec((Cout, 1), lambda n, s: (0, 0)),
            ],
            out_specs=pl.BlockSpec((None, Cout, ts), lambda n, s: (n, 0, s)),
        ),
        compiler_params=pltpu.CompilerParams(
            dimension_semantics=("parallel", "parallel"),
            vmem_limit_bytes=_vmem_limit(K * ts * 4, Cout * ts * 4,
                                         Cout * K * 4, Cout * 4),
        ),
    )(x_nks, w, b.reshape(Cout, 1))


# ---------------------------------------------------------------------------
# Kernel 3: dense layer (PyTorch Linear), tiled over output features (lanes).
# ---------------------------------------------------------------------------
def _dense_kernel(x_ref, w_ref, b_ref, o_ref, *, relu):
    acc = jnp.dot(x_ref[...], w_ref[...], preferred_element_type=jnp.float32)
    acc = acc + b_ref[...]
    if relu:
        acc = jnp.maximum(acc, 0.0)
    o_ref[...] = acc.astype(o_ref.dtype)


def dense(x, w, b, *, relu=False, feature_tile=2048):
    """x: (M, K), w: (out_f, K) [PyTorch layout], b: (out_f,) -> (M, out_f)."""
    M, K = x.shape
    out_f = w.shape[0]
    wT = w.T                                   # one-time small weight transpose
    tn = out_f if out_f <= feature_tile else feature_tile
    grid = (pl.cdiv(out_f, tn),)
    return pl.pallas_call(
        functools.partial(_dense_kernel, relu=relu),
        out_shape=jax.ShapeDtypeStruct((M, out_f), x.dtype),
        grid_spec=pltpu.PrefetchScalarGridSpec(
            num_scalar_prefetch=0,
            grid=grid,
            in_specs=[
                pl.BlockSpec((M, K), lambda j: (0, 0)),
                pl.BlockSpec((K, tn), lambda j: (0, j)),
                pl.BlockSpec((1, tn), lambda j: (0, j)),
            ],
            out_specs=pl.BlockSpec((M, tn), lambda j: (0, j)),
        ),
        compiler_params=pltpu.CompilerParams(
            dimension_semantics=("parallel",),
            vmem_limit_bytes=_vmem_limit(M * K * 4, K * tn * 4,
                                         M * tn * 4, tn * 4),
        ),
    )(x, wT, b.reshape(1, out_f))


# ---------------------------------------------------------------------------
# JAX-side helpers (no clean single-kernel Pallas equivalent).
# ---------------------------------------------------------------------------
def _im2col_3d(x, kernel=3, stride=2, pad=1):
    """NCDHW -> (N, C*k^3, Do*Ho*Wo) patches, tap order (c, kd, kh, kw)."""
    N, C, D, H, W = x.shape
    Do = (D + 2 * pad - kernel) // stride + 1
    Ho = (H + 2 * pad - kernel) // stride + 1
    Wo = (W + 2 * pad - kernel) // stride + 1
    xp = jnp.pad(x, ((0, 0), (0, 0), (pad, pad), (pad, pad), (pad, pad)))
    taps = []
    for kd in range(kernel):
        for kh in range(kernel):
            for kw in range(kernel):
                taps.append(xp[:, :,
                               kd:kd + stride * (Do - 1) + 1:stride,
                               kh:kh + stride * (Ho - 1) + 1:stride,
                               kw:kw + stride * (Wo - 1) + 1:stride])
    col = jnp.stack(taps, axis=2)                     # (N, C, k^3, Do, Ho, Wo)
    return col.reshape(N, C * kernel ** 3, Do * Ho * Wo), (Do, Ho, Wo)


def _linear_interp_matrix(s_in, s_out, dtype=jnp.float32):
    """Row-stochastic matrix M (s_out, s_in): align_corners=True linear interp."""
    if s_in == 1:
        return jnp.ones((s_out, 1), dtype)
    pos = jnp.arange(s_out, dtype=jnp.float32) * ((s_in - 1) / (s_out - 1))
    lo = jnp.clip(jnp.floor(pos).astype(jnp.int32), 0, s_in - 2)
    frac = pos - lo.astype(jnp.float32)
    rows = jnp.arange(s_out)
    m = jnp.zeros((s_out, s_in), dtype)
    m = m.at[rows, lo].add((1.0 - frac).astype(dtype))
    m = m.at[rows, lo + 1].add(frac.astype(dtype))
    return m


def trilinear_upsample_x2(x, scale=2):
    # TODO(synk): trilinear (align_corners=True) upsample left to XLA as three
    # separable interpolation-matrix contractions; not a dedicated Pallas kernel.
    N, C, D, H, W = x.shape
    md = _linear_interp_matrix(D, D * scale, x.dtype)
    mh = _linear_interp_matrix(H, H * scale, x.dtype)
    mw = _linear_interp_matrix(W, W * scale, x.dtype)
    y = jnp.einsum('od,ncdhw->ncohw', md, x)
    y = jnp.einsum('ph,ncdhw->ncdpw', mh, y)
    y = jnp.einsum('qw,ncdhw->ncdhq', mw, y)
    return y


# ---------------------------------------------------------------------------
# Full VDResampling forward.
# ---------------------------------------------------------------------------
def vd_resampling_forward(x, params, sample_key, *, num_groups=8,
                          dense_features=(4, 4, 8)):
    N, C, D, H, W = x.shape
    df0, df1, df2 = dense_features

    # 1) GroupNorm + ReLU (Pallas), NCDHW native: reshape is free, no transpose.
    gn = groupnorm_relu(x.reshape(N, C, D * H * W),
                        params['gn_gamma'], params['gn_beta'],
                        num_groups=num_groups)
    gn = gn.reshape(N, C, D, H, W)

    # 2) conv1: 3x3x3, stride 2, pad 1 -> im2col + Pallas channel matmul.
    col, (Do, Ho, Wo) = _im2col_3d(gn, kernel=3, stride=2, pad=1)
    w_col = params['conv1_w'].reshape(params['conv1_w'].shape[0], -1)
    c1 = channel_matmul(col, w_col, params['conv1_b'])        # (N, 16, Do*Ho*Wo)

    # 3) flatten + dense1 -> distr.
    flat = c1.reshape(N, -1)
    distr = dense(flat, params['dense1_w'], params['dense1_b'])  # (N, 256)

    # 4) VDraw: sample Normal(mu, sigma)  (RNG via jax.random, not Pallas).
    mu, sigma = distr[:, :128], distr[:, 128:]
    eps_n = jax.random.normal(sample_key, mu.shape, dtype=mu.dtype)
    z = mu + sigma * eps_n

    # 5) dense2 + ReLU (fused inside the Pallas kernel).
    d2 = dense(z, params['dense2_w'], params['dense2_b'], relu=True)

    # 6) up0.conv1: 1x1x1 conv = channel matmul in native (C, spatial) layout.
    feat = d2.reshape(N, 128, df0 * df1 * df2)
    up = channel_matmul(feat, params['up0_w'].reshape(-1, 128), params['up0_b'])
    up = up.reshape(N, -1, df0, df1, df2)

    # 7) trilinear x2, align_corners=True.
    out = trilinear_upsample_x2(up)
    return out, distr


# ---------------------------------------------------------------------------
# Plain-JAX reference (same math, same RNG draw) for validation.
# ---------------------------------------------------------------------------
def reference_forward(x, params, sample_key, *, num_groups=8,
                      dense_features=(4, 4, 8)):
    N, C = x.shape[:2]
    df0, df1, df2 = dense_features
    xg = x.reshape(N, num_groups, -1)
    mean = xg.mean(axis=2, keepdims=True)
    var = xg.var(axis=2, keepdims=True)
    y = ((xg - mean) / jnp.sqrt(var + 1e-5)).reshape(x.shape)
    y = y * params['gn_gamma'].reshape(1, C, 1, 1, 1) \
          + params['gn_beta'].reshape(1, C, 1, 1, 1)
    y = jnp.maximum(y, 0.0)
    c1 = lax.conv_general_dilated(
        y, params['conv1_w'], window_strides=(2, 2, 2),
        padding=((1, 1), (1, 1), (1, 1)),
        dimension_numbers=('NCDHW', 'OIDHW', 'NCDHW'))
    c1 = c1 + params['conv1_b'].reshape(1, -1, 1, 1, 1)
    flat = c1.reshape(N, -1)
    distr = flat @ params['dense1_w'].T + params['dense1_b']
    mu, sigma = distr[:, :128], distr[:, 128:]
    z = mu + sigma * jax.random.normal(sample_key, mu.shape, dtype=mu.dtype)
    d2 = jnp.maximum(z @ params['dense2_w'].T + params['dense2_b'], 0.0)
    feat = d2.reshape(N, 128, df0, df1, df2)
    up = jnp.einsum('ncdhw,oc->nodhw', feat, params['up0_w'].reshape(-1, 128))
    up = up + params['up0_b'].reshape(1, -1, 1, 1, 1)
    return trilinear_upsample_x2(up), distr


if __name__ == "__main__":
    key = jax.random.PRNGKey(0)
    keys = jax.random.split(key, 12)

    # Small shapes consistent with the module (GroupNorm needs C % 8 == 0;
    # dense_features chosen so flattened spatial sizes are lane-friendly).
    N = 2
    in_chans, out_chans = 32, 32
    dense_features = (4, 4, 8)
    df0, df1, df2 = dense_features
    D, H, W = 2 * df0, 2 * df1, 2 * df2        # conv1 (k3,s2,p1) halves spatial
    flat16 = 16 * df0 * df1 * df2              # dense1 in_features
    flat128 = 128 * df0 * df1 * df2            # dense2 out_features

    def rnd(k, shape, scale=0.05):
        return scale * jax.random.normal(k, shape, dtype=jnp.float32)

    params = dict(
        gn_gamma=1.0 + rnd(keys[0], (in_chans,)),
        gn_beta=rnd(keys[1], (in_chans,)),
        conv1_w=rnd(keys[2], (16, in_chans, 3, 3, 3)),
        conv1_b=rnd(keys[3], (16,)),
        dense1_w=rnd(keys[4], (256, flat16)),
        dense1_b=rnd(keys[5], (256,)),
        dense2_w=rnd(keys[6], (flat128, 128)),
        dense2_b=rnd(keys[7], (flat128,)),
        up0_w=rnd(keys[8], (out_chans, 128, 1, 1, 1)),
        up0_b=rnd(keys[9], (out_chans,)),
    )
    x = jax.random.normal(keys[10], (N, in_chans, D, H, W), dtype=jnp.float32)
    sample_key = keys[11]

    out, distr = vd_resampling_forward(x, params, sample_key,
                                       num_groups=8,
                                       dense_features=dense_features)
    out, distr = jax.block_until_ready((out, distr))

    assert out.shape == (N, out_chans, D, H, W)
    assert distr.shape == (N, 256)

    # Strict check of the GroupNorm+ReLU Pallas kernel (pure VPU math).
    gn_ker = groupnorm_relu(x.reshape(N, in_chans, -1),
                            params['gn_gamma'], params['gn_beta'])
    xg = x.reshape(N, 8, -1)
    gn_ref = ((xg - xg.mean(2, keepdims=True))
              / jnp.sqrt(xg.var(2, keepdims=True) + 1e-5)).reshape(N, in_chans, -1)
    gn_ref = jnp.maximum(
        gn_ref * params['gn_gamma'][None, :, None]
        + params['gn_beta'][None, :, None], 0.0)
    assert jnp.allclose(gn_ker, gn_ref, atol=1e-4, rtol=1e-4)

    # End-to-end check vs plain-JAX reference (same RNG draw; loose tolerance
    # to absorb MXU-vs-XLA f32 matmul precision differences).
    ref_out, ref_distr = reference_forward(x, params, sample_key,
                                           num_groups=8,
                                           dense_features=dense_features)
    assert jnp.allclose(distr, ref_distr, atol=3e-2, rtol=3e-2)
    assert jnp.allclose(out, ref_out, atol=3e-2, rtol=3e-2)
    assert bool(jnp.all(jnp.isfinite(out)))

    print("KERNEL_OK")
</pallas_src>

<mosaic_0001>
module attributes {stable_mosaic.version = 11 : i64} {
  func.func @_gn_relu_kernel(%arg0: i32, %arg1: memref<1x32x1024xf32, #tpu.memory_space<vmem>>, %arg2: memref<32x1xf32, #tpu.memory_space<vmem>>, %arg3: memref<32x1xf32, #tpu.memory_space<vmem>>, %arg4: memref<1x32x1024xf32, #tpu.memory_space<vmem>>) attributes {dimension_semantics = [#tpu.dimension_semantics<parallel>], iteration_bounds = array<i64: 2>, scalar_prefetch = 0 : i64, scratch_operands = 0 : i64, tpu.core_type = #tpu.core_type<tc>, window_params = [{transform_indices = @transform_0, window_bounds = array<i64: 1, 32, 1024>}, {pipeline_mode = #tpu.pipeline_mode<synchronous>, transform_indices = @transform_1, window_bounds = array<i64: 32, 1>}, {pipeline_mode = #tpu.pipeline_mode<synchronous>, transform_indices = @transform_2, window_bounds = array<i64: 32, 1>}, {transform_indices = @transform_3, window_bounds = array<i64: 1, 32, 1024>}]} {
    %c0 = arith.constant 0 : index
    %c0_0 = arith.constant 0 : index
    %c0_1 = arith.constant 0 : index
    %0 = vector.load %arg1[%c0, %c0_0, %c0_1] : memref<1x32x1024xf32, #tpu.memory_space<vmem>>, vector<1x4x1024xf32>
    %1 = vector.shape_cast %0 : vector<1x4x1024xf32> to vector<4x1024xf32>
    %cst = arith.constant dense<0.000000e+00> : vector<4xf32>
    %2 = vector.multi_reduction <add>, %1, %cst [1] : vector<4x1024xf32> to vector<4xf32>
    %3 = vector.shape_cast %2 : vector<4xf32> to vector<4x1xf32>
    %cst_2 = arith.constant dense<0.000000e+00> : vector<1xf32>
    %4 = vector.multi_reduction <add>, %3, %cst_2 [0] : vector<4x1xf32> to vector<1xf32>
    %5 = vector.shape_cast %4 : vector<1xf32> to vector<1x1xf32>
    %cst_3 = arith.constant 2.44140625E-4 : f32
    %6 = vector.broadcast %cst_3 : f32 to vector<1x1xf32>
    %7 = arith.mulf %5, %6 : vector<1x1xf32>
    %8 = vector.broadcast %7 : vector<1x1xf32> to vector<4x1024xf32>
    %9 = arith.subf %1, %8 : vector<4x1024xf32>
    %10 = arith.mulf %9, %9 : vector<4x1024xf32>
    %cst_4 = arith.constant dense<0.000000e+00> : vector<4xf32>
    %11 = vector.multi_reduction <add>, %10, %cst_4 [1] : vector<4x1024xf32> to vector<4xf32>
    %12 = vector.shape_cast %11 : vector<4xf32> to vector<4x1xf32>
    %cst_5 = arith.constant dense<0.000000e+00> : vector<1xf32>
    %13 = vector.multi_reduction <add>, %12, %cst_5 [0] : vector<4x1xf32> to vector<1xf32>
    %14 = vector.shape_cast %13 : vector<1xf32> to vector<1x1xf32>
    %cst_6 = arith.constant 2.44140625E-4 : f32
    %15 = vector.broadcast %cst_6 : f32 to vector<1x1xf32>
    %16 = arith.mulf %14, %15 : vector<1x1xf32>
    %cst_7 = arith.constant 9.99999974E-6 : f32
    %17 = vector.broadcast %cst_7 : f32 to vector<1x1xf32>
    %18 = arith.addf %16, %17 : vector<1x1xf32>
    %19 = math.rsqrt %18 : vector<1x1xf32>
    %20 = vector.broadcast %19 : vector<1x1xf32> to vector<4x1024xf32>
    %21 = arith.mulf %9, %20 : vector<4x1024xf32>
    %c0_8 = arith.constant 0 : index
    %c0_9 = arith.constant 0 : index
    %22 = vector.load %arg2[%c0_8, %c0_9] : memref<32x1xf32, #tpu.memory_space<vmem>>, vector<4x1xf32>
    %23 = vector.broadcast %22 : vector<4x1xf32> to vector<4x1024xf32>
    %24 = arith.mulf %21, %23 : vector<4x1024xf32>
    %c0_10 = arith.constant 0 : index
    %c0_11 = arith.constant 0 : index
    %25 = vector.load %arg3[%c0_10, %c0_11] : memref<32x1xf32, #tpu.memory_space<vmem>>, vector<4x1xf32>
    %26 = vector.broadcast %25 : vector<4x1xf32> to vector<4x1024xf32>
    %27 = arith.addf %24, %26 : vector<4x1024xf32>
    %cst_12 = arith.constant 0.000000e+00 : f32
    %28 = vector.broadcast %cst_12 : f32 to vector<4x1024xf32>
    %29 = arith.maximumf %27, %28 : vector<4x1024xf32>
    %c0_13 = arith.constant 0 : index
    %c0_14 = arith.constant 0 : index
    %c0_15 = arith.constant 0 : index
    %30 = vector.load %arg4[%c0_13, %c0_14, %c0_15] : memref<1x32x1024xf32, #tpu.memory_space<vmem>>, vector<1x4x1024xf32>
    %31 = vector.shape_cast %30 : vector<1x4x1024xf32> to vector<4x1024xf32>
    %32 = vector.shape_cast %29 : vector<4x1024xf32> to vector<1x4x1024xf32>
    tpu.vector_store %arg4[%c0_13, %c0_14, %c0_15], %32 {strides = array<i32>} : memref<1x32x1024xf32, #tpu.memory_space<vmem>>, vector<1x4x1024xf32>,
    %c0_16 = arith.constant 0 : index
    %c4 = arith.constant 4 : index
    %c0_17 = arith.constant 0 : index
    %33 = vector.load %arg1[%c0_16, %c4, %c0_17] : memref<1x32x1024xf32, #tpu.memory_space<vmem>>, vector<1x4x1024xf32>
    %34 = vector.shape_cast %33 : vector<1x4x1024xf32> to vector<4x1024xf32>
    %cst_18 = arith.constant dense<0.000000e+00> : vector<4xf32>
    %35 = vector.multi_reduction <add>, %34, %cst_18 [1] : vector<4x1024xf32> to vector<4xf32>
    %36 = vector.shape_cast %35 : vector<4xf32> to vector<4x1xf32>
    %cst_19 = arith.constant dense<0.000000e+00> : vector<1xf32>
    %37 = vector.multi_reduction <add>, %36, %cst_19 [0] : vector<4x1xf32> to vector<1xf32>
    %38 = vector.shape_cast %37 : vector<1xf32> to vector<1x1xf32>
    %cst_20 = arith.constant 2.44140625E-4 : f32
    %39 = vector.broadcast %cst_20 : f32 to vector<1x1xf32>
    %40 = arith.mulf %38, %39 : vector<1x1xf32>
    %41 = vector.broadcast %40 : vector<1x1xf32> to vector<4x1024xf32>
    %42 = arith.subf %34, %41 : vector<4x1024xf32>
    %43 = arith.mulf %42, %42 : vector<4x1024xf32>
    %cst_21 = arith.constant dense<0.000000e+00> : vector<4xf32>
    %44 = vector.multi_reduction <add>, %43, %cst_21 [1] : vector<4x1024xf32> to vector<4xf32>
    %45 = vector.shape_cast %44 : vector<4xf32> to vector<4x1xf32>
    %cst_22 = arith.constant dense<0.000000e+00> : vector<1xf32>
    %46 = vector.multi_reduction <add>, %45, %cst_22 [0] : vector<4x1xf32> to vector<1xf32>
    %47 = vector.shape_cast %46 : vector<1xf32> to vector<1x1xf32>
    %cst_23 = arith.constant 2.44140625E-4 : f32
    %48 = vector.broadcast %cst_23 : f32 to vector<1x1xf32>
    %49 = arith.mulf %47, %48 : vector<1x1xf32>
    %cst_24 = arith.constant 9.99999974E-6 : f32
    %50 = vector.broadcast %cst_24 : f32 to vector<1x1xf32>
    %51 = arith.addf %49, %50 : vector<1x1xf32>
    %52 = math.rsqrt %51 : vector<1x1xf32>
    %53 = vector.broadcast %52 : vector<1x1xf32> to vector<4x1024xf32>
    %54 = arith.mulf %42, %53 : vector<4x1024xf32>
    %c4_25 = arith.constant 4 : index
    %c0_26 = arith.constant 0 : index
    %55 = vector.load %arg2[%c4_25, %c0_26] : memref<32x1xf32, #tpu.memory_space<vmem>>, vector<4x1xf32>
    %56 = vector.broadcast %55 : vector<4x1xf32> to vector<4x1024xf32>
    %57 = arith.mulf %54, %56 : vector<4x1024xf32>
    %c4_27 = arith.constant 4 : index
    %c0_28 = arith.constant 0 : index
    %58 = vector.load %arg3[%c4_27, %c0_28] : memref<32x1xf32, #tpu.memory_space<vmem>>, vector<4x1xf32>
    %59 = vector.broadcast %58 : vector<4x1xf32> to vector<4x1024xf32>
    %60 = arith.addf %57, %59 : vector<4x1024xf32>
    %cst_29 = arith.constant 0.000000e+00 : f32
    %61 = vector.broadcast %cst_29 : f32 to vector<4x1024xf32>
    %62 = arith.maximumf %60, %61 : vector<4x1024xf32>
    %c0_30 = arith.constant 0 : index
    %c4_31 = arith.constant 4 : index
    %c0_32 = arith.constant 0 : index
    %63 = vector.load %arg4[%c0_30, %c4_31, %c0_32] : memref<1x32x1024xf32, #tpu.memory_space<vmem>>, vector<1x4x1024xf32>
    %64 = vector.shape_cast %63 : vector<1x4x1024xf32> to vector<4x1024xf32>
    %65 = vector.shape_cast %62 : vector<4x1024xf32> to vector<1x4x1024xf32>
    tpu.vector_store %arg4[%c0_30, %c4_31, %c0_32], %65 {strides = array<i32>} : memref<1x32x1024xf32, #tpu.memory_space<vmem>>, vector<1x4x1024xf32>,
    %c0_33 = arith.constant 0 : index
    %c8 = arith.constant 8 : index
    %c0_34 = arith.constant 0 : index
    %66 = vector.load %arg1[%c0_33, %c8, %c0_34] : memref<1x32x1024xf32, #tpu.memory_space<vmem>>, vector<1x4x1024xf32>
    %67 = vector.shape_cast %66 : vector<1x4x1024xf32> to vector<4x1024xf32>
    %cst_35 = arith.constant dense<0.000000e+00> : vector<4xf32>
    %68 = vector.multi_reduction <add>, %67, %cst_35 [1] : vector<4x1024xf32> to vector<4xf32>
    %69 = vector.shape_cast %68 : vector<4xf32> to vector<4x1xf32>
    %cst_36 = arith.constant dense<0.000000e+00> : vector<1xf32>
    %70 = vector.multi_reduction <add>, %69, %cst_36 [0] : vector<4x1xf32> to vector<1xf32>
    %71 = vector.shape_cast %70 : vector<1xf32> to vector<1x1xf32>
    %cst_37 = arith.constant 2.44140625E-4 : f32
    %72 = vector.broadcast %cst_37 : f32 to vector<1x1xf32>
    %73 = arith.mulf %71, %72 : vector<1x1xf32>
    %74 = vector.broadcast %73 : vector<1x1xf32> to vector<4x1024xf32>
    %75 = arith.subf %67, %74 : vector<4x1024xf32>
    %76 = arith.mulf %75, %75 : vector<4x1024xf32>
    %cst_38 = arith.constant dense<0.000000e+00> : vector<4xf32>
    %77 = vector.multi_reduction <add>, %76, %cst_38 [1] : vector<4x1024xf32> to vector<4xf32>
    %78 = vector.shape_cast %77 : vector<4xf32> to vector<4x1xf32>
    %cst_39 = arith.constant dense<0.000000e+00> : vector<1xf32>
    %79 = vector.multi_reduction <add>, %78, %cst_39 [0] : vector<4x1xf32> to vector<1xf32>
    %80 = vector.shape_cast %79 : vector<1xf32> to vector<1x1xf32>
    %cst_40 = arith.constant 2.44140625E-4 : f32
    %81 = vector.broadcast %cst_40 : f32 to vector<1x1xf32>
    %82 = arith.mulf %80, %81 : vector<1x1xf32>
    %cst_41 = arith.constant 9.99999974E-6 : f32
    %83 = vector.broadcast %cst_41 : f32 to vector<1x1xf32>
    %84 = arith.addf %82, %83 : vector<1x1xf32>
    %85 = math.rsqrt %84 : vector<1x1xf32>
    %86 = vector.broadcast %85 : vector<1x1xf32> to vector<4x1024xf32>
    %87 = arith.mulf %75, %86 : vector<4x1024xf32>
    %c8_42 = arith.constant 8 : index
    %c0_43 = arith.constant 0 : index
    %88 = vector.load %arg2[%c8_42, %c0_43] : memref<32x1xf32, #tpu.memory_space<vmem>>, vector<4x1xf32>
    %89 = vector.broadcast %88 : vector<4x1xf32> to vector<4x1024xf32>
    %90 = arith.mulf %87, %89 : vector<4x1024xf32>
    %c8_44 = arith.constant 8 : index
    %c0_45 = arith.constant 0 : index
    %91 = vector.load %arg3[%c8_44, %c0_45] : memref<32x1xf32, #tpu.memory_space<vmem>>, vector<4x1xf32>
    %92 = vector.broadcast %91 : vector<4x1xf32> to vector<4x1024xf32>
    %93 = arith.addf %90, %92 : vector<4x1024xf32>
    %cst_46 = arith.constant 0.000000e+00 : f32
    %94 = vector.broadcast %cst_46 : f32 to vector<4x1024xf32>
    %95 = arith.maximumf %93, %94 : vector<4x1024xf32>
    %c0_47 = arith.constant 0 : index
    %c8_48 = arith.constant 8 : index
    %c0_49 = arith.constant 0 : index
    %96 = vector.load %arg4[%c0_47, %c8_48, %c0_49] : memref<1x32x1024xf32, #tpu.memory_space<vmem>>, vector<1x4x1024xf32>
    %97 = vector.shape_cast %96 : vector<1x4x1024xf32> to vector<4x1024xf32>
    %98 = vector.shape_cast %95 : vector<4x1024xf32> to vector<1x4x1024xf32>
    tpu.vector_store %arg4[%c0_47, %c8_48, %c0_49], %98 {strides = array<i32>} : memref<1x32x1024xf32, #tpu.memory_space<vmem>>, vector<1x4x1024xf32>,
    %c0_50 = arith.constant 0 : index
    %c12 = arith.constant 12 : index
    %c0_51 = arith.constant 0 : index
    %99 = vector.load %arg1[%c0_50, %c12, %c0_51] : memref<1x32x1024xf32, #tpu.memory_space<vmem>>, vector<1x4x1024xf32>
    %100 = vector.shape_cast %99 : vector<1x4x1024xf32> to vector<4x1024xf32>
    %cst_52 = arith.constant dense<0.000000e+00> : vector<4xf32>
    %101 = vector.multi_reduction <add>, %100, %cst_52 [1] : vector<4x1024xf32> to vector<4xf32>
    %102 = vector.shape_cast %101 : vector<4xf32> to vector<4x1xf32>
    %cst_53 = arith.constant dense<0.000000e+00> : vector<1xf32>
    %103 = vector.multi_reduction <add>, %102, %cst_53 [0] : vector<4x1xf32> to vector<1xf32>
    %104 = vector.shape_cast %103 : vector<1xf32> to vector<1x1xf32>
    %cst_54 = arith.constant 2.44140625E-4 : f32
    %105 = vector.broadcast %cst_54 : f32 to vector<1x1xf32>
    %106 = arith.mulf %104, %105 : vector<1x1xf32>
    %107 = vector.broadcast %106 : vector<1x1xf32> to vector<4x1024xf32>
    %108 = arith.subf %100, %107 : vector<4x1024xf32>
    %109 = arith.mulf %108, %108 : vector<4x1024xf32>
    %cst_55 = arith.constant dense<0.000000e+00> : vector<4xf32>
    %110 = vector.multi_reduction <add>, %109, %cst_55 [1] : vector<4x1024xf32> to vector<4xf32>
    %111 = vector.shape_cast %110 : vector<4xf32> to vector<4x1xf32>
    %cst_56 = arith.constant dense<0.000000e+00> : vector<1xf32>
    %112 = vector.multi_reduction <add>, %111, %cst_56 [0] : vector<4x1xf32> to vector<1xf32>
    %113 = vector.shape_cast %112 : vector<1xf32> to vector<1x1xf32>
    %cst_57 = arith.constant 2.44140625E-4 : f32
    %114 = vector.broadcast %cst_57 : f32 to vector<1x1xf32>
    %115 = arith.mulf %113, %114 : vector<1x1xf32>
    %cst_58 = arith.constant 9.99999974E-6 : f32
    %116 = vector.broadcast %cst_58 : f32 to vector<1x1xf32>
    %117 = arith.addf %115, %116 : vector<1x1xf32>
    %118 = math.rsqrt %117 : vector<1x1xf32>
    %119 = vector.broadcast %118 : vector<1x1xf32> to vector<4x1024xf32>
    %120 = arith.mulf %108, %119 : vector<4x1024xf32>
    %c12_59 = arith.constant 12 : index
    %c0_60 = arith.constant 0 : index
    %121 = vector.load %arg2[%c12_59, %c0_60] : memref<32x1xf32, #tpu.memory_space<vmem>>, vector<4x1xf32>
    %122 = vector.broadcast %121 : vector<4x1xf32> to vector<4x1024xf32>
    %123 = arith.mulf %120, %122 : vector<4x1024xf32>
    %c12_61 = arith.constant 12 : index
    %c0_62 = arith.constant 0 : index
    %124 = vector.load %arg3[%c12_61, %c0_62] : memref<32x1xf32, #tpu.memory_space<vmem>>, vector<4x1xf32>
    %125 = vector.broadcast %124 : vector<4x1xf32> to vector<4x1024xf32>
    %126 = arith.addf %123, %125 : vector<4x1024xf32>
    %cst_63 = arith.constant 0.000000e+00 : f32
    %127 = vector.broadcast %cst_63 : f32 to vector<4x1024xf32>
    %128 = arith.maximumf %126, %127 : vector<4x1024xf32>
    %c0_64 = arith.constant 0 : index
    %c12_65 = arith.constant 12 : index
    %c0_66 = arith.constant 0 : index
    %129 = vector.load %arg4[%c0_64, %c12_65, %c0_66] : memref<1x32x1024xf32, #tpu.memory_space<vmem>>, vector<1x4x1024xf32>
    %130 = vector.shape_cast %129 : vector<1x4x1024xf32> to vector<4x1024xf32>
    %131 = vector.shape_cast %128 : vector<4x1024xf32> to vector<1x4x1024xf32>
    tpu.vector_store %arg4[%c0_64, %c12_65, %c0_66], %131 {strides = array<i32>} : memref<1x32x1024xf32, #tpu.memory_space<vmem>>, vector<1x4x1024xf32>,
    %c0_67 = arith.constant 0 : index
    %c16 = arith.constant 16 : index
    %c0_68 = arith.constant 0 : index
    %132 = vector.load %arg1[%c0_67, %c16, %c0_68] : memref<1x32x1024xf32, #tpu.memory_space<vmem>>, vector<1x4x1024xf32>
    %133 = vector.shape_cast %132 : vector<1x4x1024xf32> to vector<4x1024xf32>
    %cst_69 = arith.constant dense<0.000000e+00> : vector<4xf32>
    %134 = vector.multi_reduction <add>, %133, %cst_69 [1] : vector<4x1024xf32> to vector<4xf32>
    %135 = vector.shape_cast %134 : vector<4xf32> to vector<4x1xf32>
    %cst_70 = arith.constant dense<0.000000e+00> : vector<1xf32>
    %136 = vector.multi_reduction <add>, %135, %cst_70 [0] : vector<4x1xf32> to vector<1xf32>
    %137 = vector.shape_cast %136 : vector<1xf32> to vector<1x1xf32>
    %cst_71 = arith.constant 2.44140625E-4 : f32
    %138 = vector.broadcast %cst_71 : f32 to vector<1x1xf32>
    %139 = arith.mulf %137, %138 : vector<1x1xf32>
    %140 = vector.broadcast %139 : vector<1x1xf32> to vector<4x1024xf32>
    %141 = arith.subf %133, %140 : vector<4x1024xf32>
    %142 = arith.mulf %141, %141 : vector<4x1024xf32>
    %cst_72 = arith.constant dense<0.000000e+00> : vector<4xf32>
    %143 = vector.multi_reduction <add>, %142, %cst_72 [1] : vector<4x1024xf32> to vector<4xf32>
    %144 = vector.shape_cast %143 : vector<4xf32> to vector<4x1xf32>
    %cst_73 = arith.constant dense<0.000000e+00> : vector<1xf32>
    %145 = vector.multi_reduction <add>, %144, %cst_73 [0] : vector<4x1xf32> to vector<1xf32>
    %146 = vector.shape_cast %145 : vector<1xf32> to vector<1x1xf32>
    %cst_74 = arith.constant 2.44140625E-4 : f32
    %147 = vector.broadcast %cst_74 : f32 to vector<1x1xf32>
    %148 = arith.mulf %146, %147 : vector<1x1xf32>
    %cst_75 = arith.constant 9.99999974E-6 : f32
    %149 = vector.broadcast %cst_75 : f32 to vector<1x1xf32>
    %150 = arith.addf %148, %149 : vector<1x1xf32>
    %151 = math.rsqrt %150 : vector<1x1xf32>
    %152 = vector.broadcast %151 : vector<1x1xf32> to vector<4x1024xf32>
    %153 = arith.mulf %141, %152 : vector<4x1024xf32>
    %c16_76 = arith.constant 16 : index
    %c0_77 = arith.constant 0 : index
    %154 = vector.load %arg2[%c16_76, %c0_77] : memref<32x1xf32, #tpu.memory_space<vmem>>, vector<4x1xf32>
    %155 = vector.broadcast %154 : vector<4x1xf32> to vector<4x1024xf32>
    %156 = arith.mulf %153, %155 : vector<4x1024xf32>
    %c16_78 = arith.constant 16 : index
    %c0_79 = arith.constant 0 : index
    %157 = vector.load %arg3[%c16_78, %c0_79] : memref<32x1xf32, #tpu.memory_space<vmem>>, vector<4x1xf32>
    %158 = vector.broadcast %157 : vector<4x1xf32> to vector<4x1024xf32>
    %159 = arith.addf %156, %158 : vector<4x1024xf32>
    %cst_80 = arith.constant 0.000000e+00 : f32
    %160 = vector.broadcast %cst_80 : f32 to vector<4x1024xf32>
    %161 = arith.maximumf %159, %160 : vector<4x1024xf32>
    %c0_81 = arith.constant 0 : index
    %c16_82 = arith.constant 16 : index
    %c0_83 = arith.constant 0 : index
    %162 = vector.load %arg4[%c0_81, %c16_82, %c0_83] : memref<1x32x1024xf32, #tpu.memory_space<vmem>>, vector<1x4x1024xf32>
    %163 = vector.shape_cast %162 : vector<1x4x1024xf32> to vector<4x1024xf32>
    %164 = vector.shape_cast %161 : vector<4x1024xf32> to vector<1x4x1024xf32>
    tpu.vector_store %arg4[%c0_81, %c16_82, %c0_83], %164 {strides = array<i32>} : memref<1x32x1024xf32, #tpu.memory_space<vmem>>, vector<1x4x1024xf32>,
    %c0_84 = arith.constant 0 : index
    %c20 = arith.constant 20 : index
    %c0_85 = arith.constant 0 : index
    %165 = vector.load %arg1[%c0_84, %c20, %c0_85] : memref<1x32x1024xf32, #tpu.memory_space<vmem>>, vector<1x4x1024xf32>
    %166 = vector.shape_cast %165 : vector<1x4x1024xf32> to vector<4x1024xf32>
    %cst_86 = arith.constant dense<0.000000e+00> : vector<4xf32>
    %167 = vector.multi_reduction <add>, %166, %cst_86 [1] : vector<4x1024xf32> to vector<4xf32>
    %168 = vector.shape_cast %167 : vector<4xf32> to vector<4x1xf32>
    %cst_87 = arith.constant dense<0.000000e+00> : vector<1xf32>
    %169 = vector.multi_reduction <add>, %168, %cst_87 [0] : vector<4x1xf32> to vector<1xf32>
    %170 = vector.shape_cast %169 : vector<1xf32> to vector<1x1xf32>
    %cst_88 = arith.constant 2.44140625E-4 : f32
    %171 = vector.broadcast %cst_88 : f32 to vector<1x1xf32>
    %172 = arith.mulf %170, %171 : vector<1x1xf32>
    %173 = vector.broadcast %172 : vector<1x1xf32> to vector<4x1024xf32>
    %174 = arith.subf %166, %173 : vector<4x1024xf32>
    %175 = arith.mulf %174, %174 : vector<4x1024xf32>
    %cst_89 = arith.constant dense<0.000000e+00> : vector<4xf32>
    %176 = vector.multi_reduction <add>, %175, %cst_89 [1] : vector<4x1024xf32> to vector<4xf32>
    %177 = vector.shape_cast %176 : vector<4xf32> to vector<4x1xf32>
    %cst_90 = arith.constant dense<0.000000e+00> : vector<1xf32>
    %178 = vector.multi_reduction <add>, %177, %cst_90 [0] : vector<4x1xf32> to vector<1xf32>
    %179 = vector.shape_cast %178 : vector<1xf32> to vector<1x1xf32>
    %cst_91 = arith.constant 2.44140625E-4 : f32
    %180 = vector.broadcast %cst_91 : f32 to vector<1x1xf32>
    %181 = arith.mulf %179, %180 : vector<1x1xf32>
    %cst_92 = arith.constant 9.99999974E-6 : f32
    %182 = vector.broadcast %cst_92 : f32 to vector<1x1xf32>
    %183 = arith.addf %181, %182 : vector<1x1xf32>
    %184 = math.rsqrt %183 : vector<1x1xf32>
    %185 = vector.broadcast %184 : vector<1x1xf32> to vector<4x1024xf32>
    %186 = arith.mulf %174, %185 : vector<4x1024xf32>
    %c20_93 = arith.constant 20 : index
    %c0_94 = arith.constant 0 : index
    %187 = vector.load %arg2[%c20_93, %c0_94] : memref<32x1xf32, #tpu.memory_space<vmem>>, vector<4x1xf32>
    %188 = vector.broadcast %187 : vector<4x1xf32> to vector<4x1024xf32>
    %189 = arith.mulf %186, %188 : vector<4x1024xf32>
    %c20_95 = arith.constant 20 : index
    %c0_96 = arith.constant 0 : index
    %190 = vector.load %arg3[%c20_95, %c0_96] : memref<32x1xf32, #tpu.memory_space<vmem>>, vector<4x1xf32>
    %191 = vector.broadcast %190 : vector<4x1xf32> to vector<4x1024xf32>
    %192 = arith.addf %189, %191 : vector<4x1024xf32>
    %cst_97 = arith.constant 0.000000e+00 : f32
    %193 = vector.broadcast %cst_97 : f32 to vector<4x1024xf32>
    %194 = arith.maximumf %192, %193 : vector<4x1024xf32>
    %c0_98 = arith.constant 0 : index
    %c20_99 = arith.constant 20 : index
    %c0_100 = arith.constant 0 : index
    %195 = vector.load %arg4[%c0_98, %c20_99, %c0_100] : memref<1x32x1024xf32, #tpu.memory_space<vmem>>, vector<1x4x1024xf32>
    %196 = vector.shape_cast %195 : vector<1x4x1024xf32> to vector<4x1024xf32>
    %197 = vector.shape_cast %194 : vector<4x1024xf32> to vector<1x4x1024xf32>
    tpu.vector_store %arg4[%c0_98, %c20_99, %c0_100], %197 {strides = array<i32>} : memref<1x32x1024xf32, #tpu.memory_space<vmem>>, vector<1x4x1024xf32>,
    %c0_101 = arith.constant 0 : index
    %c24 = arith.constant 24 : index
    %c0_102 = arith.constant 0 : index
    %198 = vector.load %arg1[%c0_101, %c24, %c0_102] : memref<1x32x1024xf32, #tpu.memory_space<vmem>>, vector<1x4x1024xf32>
    %199 = vector.shape_cast %198 : vector<1x4x1024xf32> to vector<4x1024xf32>
    %cst_103 = arith.constant dense<0.000000e+00> : vector<4xf32>
    %200 = vector.multi_reduction <add>, %199, %cst_103 [1] : vector<4x1024xf32> to vector<4xf32>
    %201 = vector.shape_cast %200 : vector<4xf32> to vector<4x1xf32>
    %cst_104 = arith.constant dense<0.000000e+00> : vector<1xf32>
    %202 = vector.multi_reduction <add>, %201, %cst_104 [0] : vector<4x1xf32> to vector<1xf32>
    %203 = vector.shape_cast %202 : vector<1xf32> to vector<1x1xf32>
    %cst_105 = arith.constant 2.44140625E-4 : f32
    %204 = vector.broadcast %cst_105 : f32 to vector<1x1xf32>
    %205 = arith.mulf %203, %204 : vector<1x1xf32>
    %206 = vector.broadcast %205 : vector<1x1xf32> to vector<4x1024xf32>
    %207 = arith.subf %199, %206 : vector<4x1024xf32>
    %208 = arith.mulf %207, %207 : vector<4x1024xf32>
    %cst_106 = arith.constant dense<0.000000e+00> : vector<4xf32>
    %209 = vector.multi_reduction <add>, %208, %cst_106 [1] : vector<4x1024xf32> to vector<4xf32>
    %210 = vector.shape_cast %209 : vector<4xf32> to vector<4x1xf32>
    %cst_107 = arith.constant dense<0.000000e+00> : vector<1xf32>
    %211 = vector.multi_reduction <add>, %210, %cst_107 [0] : vector<4x1xf32> to vector<1xf32>
    %212 = vector.shape_cast %211 : vector<1xf32> to vector<1x1xf32>
    %cst_108 = arith.constant 2.44140625E-4 : f32
    %213 = vector.broadcast %cst_108 : f32 to vector<1x1xf32>
    %214 = arith.mulf %212, %213 : vector<1x1xf32>
    %cst_109 = arith.constant 9.99999974E-6 : f32
    %215 = vector.broadcast %cst_109 : f32 to vector<1x1xf32>
    %216 = arith.addf %214, %215 : vector<1x1xf32>
    %217 = math.rsqrt %216 : vector<1x1xf32>
    %218 = vector.broadcast %217 : vector<1x1xf32> to vector<4x1024xf32>
    %219 = arith.mulf %207, %218 : vector<4x1024xf32>
    %c24_110 = arith.constant 24 : index
    %c0_111 = arith.constant 0 : index
    %220 = vector.load %arg2[%c24_110, %c0_111] : memref<32x1xf32, #tpu.memory_space<vmem>>, vector<4x1xf32>
    %221 = vector.broadcast %220 : vector<4x1xf32> to vector<4x1024xf32>
    %222 = arith.mulf %219, %221 : vector<4x1024xf32>
    %c24_112 = arith.constant 24 : index
    %c0_113 = arith.constant 0 : index
    %223 = vector.load %arg3[%c24_112, %c0_113] : memref<32x1xf32, #tpu.memory_space<vmem>>, vector<4x1xf32>
    %224 = vector.broadcast %223 : vector<4x1xf32> to vector<4x1024xf32>
    %225 = arith.addf %222, %224 : vector<4x1024xf32>
    %cst_114 = arith.constant 0.000000e+00 : f32
    %226 = vector.broadcast %cst_114 : f32 to vector<4x1024xf32>
    %227 = arith.maximumf %225, %226 : vector<4x1024xf32>
    %c0_115 = arith.constant 0 : index
    %c24_116 = arith.constant 24 : index
    %c0_117 = arith.constant 0 : index
    %228 = vector.load %arg4[%c0_115, %c24_116, %c0_117] : memref<1x32x1024xf32, #tpu.memory_space<vmem>>, vector<1x4x1024xf32>
    %229 = vector.shape_cast %228 : vector<1x4x1024xf32> to vector<4x1024xf32>
    %230 = vector.shape_cast %227 : vector<4x1024xf32> to vector<1x4x1024xf32>
    tpu.vector_store %arg4[%c0_115, %c24_116, %c0_117], %230 {strides = array<i32>} : memref<1x32x1024xf32, #tpu.memory_space<vmem>>, vector<1x4x1024xf32>,
    %c0_118 = arith.constant 0 : index
    %c28 = arith.constant 28 : index
    %c0_119 = arith.constant 0 : index
    %231 = vector.load %arg1[%c0_118, %c28, %c0_119] : memref<1x32x1024xf32, #tpu.memory_space<vmem>>, vector<1x4x1024xf32>
    %232 = vector.shape_cast %231 : vector<1x4x1024xf32> to vector<4x1024xf32>
    %cst_120 = arith.constant dense<0.000000e+00> : vector<4xf32>
    %233 = vector.multi_reduction <add>, %232, %cst_120 [1] : vector<4x1024xf32> to vector<4xf32>
    %234 = vector.shape_cast %233 : vector<4xf32> to vector<4x1xf32>
    %cst_121 = arith.constant dense<0.000000e+00> : vector<1xf32>
    %235 = vector.multi_reduction <add>, %234, %cst_121 [0] : vector<4x1xf32> to vector<1xf32>
    %236 = vector.shape_cast %235 : vector<1xf32> to vector<1x1xf32>
    %cst_122 = arith.constant 2.44140625E-4 : f32
    %237 = vector.broadcast %cst_122 : f32 to vector<1x1xf32>
    %238 = arith.mulf %236, %237 : vector<1x1xf32>
    %239 = vector.broadcast %238 : vector<1x1xf32> to vector<4x1024xf32>
    %240 = arith.subf %232, %239 : vector<4x1024xf32>
    %241 = arith.mulf %240, %240 : vector<4x1024xf32>
    %cst_123 = arith.constant dense<0.000000e+00> : vector<4xf32>
    %242 = vector.multi_reduction <add>, %241, %cst_123 [1] : vector<4x1024xf32> to vector<4xf32>
    %243 = vector.shape_cast %242 : vector<4xf32> to vector<4x1xf32>
    %cst_124 = arith.constant dense<0.000000e+00> : vector<1xf32>
    %244 = vector.multi_reduction <add>, %243, %cst_124 [0] : vector<4x1xf32> to vector<1xf32>
    %245 = vector.shape_cast %244 : vector<1xf32> to vector<1x1xf32>
    %cst_125 = arith.constant 2.44140625E-4 : f32
    %246 = vector.broadcast %cst_125 : f32 to vector<1x1xf32>
    %247 = arith.mulf %245, %246 : vector<1x1xf32>
    %cst_126 = arith.constant 9.99999974E-6 : f32
    %248 = vector.broadcast %cst_126 : f32 to vector<1x1xf32>
    %249 = arith.addf %247, %248 : vector<1x1xf32>
    %250 = math.rsqrt %249 : vector<1x1xf32>
    %251 = vector.broadcast %250 : vector<1x1xf32> to vector<4x1024xf32>
    %252 = arith.mulf %240, %251 : vector<4x1024xf32>
    %c28_127 = arith.constant 28 : index
    %c0_128 = arith.constant 0 : index
    %253 = vector.load %arg2[%c28_127, %c0_128] : memref<32x1xf32, #tpu.memory_space<vmem>>, vector<4x1xf32>
    %254 = vector.broadcast %253 : vector<4x1xf32> to vector<4x1024xf32>
    %255 = arith.mulf %252, %254 : vector<4x1024xf32>
    %c28_129 = arith.constant 28 : index
    %c0_130 = arith.constant 0 : index
    %256 = vector.load %arg3[%c28_129, %c0_130] : memref<32x1xf32, #tpu.memory_space<vmem>>, vector<4x1xf32>
    %257 = vector.broadcast %256 : vector<4x1xf32> to vector<4x1024xf32>
    %258 = arith.addf %255, %257 : vector<4x1024xf32>
    %cst_131 = arith.constant 0.000000e+00 : f32
    %259 = vector.broadcast %cst_131 : f32 to vector<4x1024xf32>
    %260 = arith.maximumf %258, %259 : vector<4x1024xf32>
    %c0_132 = arith.constant 0 : index
    %c28_133 = arith.constant 28 : index
    %c0_134 = arith.constant 0 : index
    %261 = vector.load %arg4[%c0_132, %c28_133, %c0_134] : memref<1x32x1024xf32, #tpu.memory_space<vmem>>, vector<1x4x1024xf32>
    %262 = vector.shape_cast %261 : vector<1x4x1024xf32> to vector<4x1024xf32>
    %263 = vector.shape_cast %260 : vector<4x1024xf32> to vector<1x4x1024xf32>
    tpu.vector_store %arg4[%c0_132, %c28_133, %c0_134], %263 {strides = array<i32>} : memref<1x32x1024xf32, #tpu.memory_space<vmem>>, vector<1x4x1024xf32>,
    return
  }
  func.func @transform_0(%arg0: i32) -> (i32, i32, i32) {
    %c0_i32 = arith.constant 0 : i32
    %c0_i32_0 = arith.constant 0 : i32
    %c0_i32_1 = arith.constant 0 : i32
    return %arg0, %c0_i32, %c0_i32_0 : i32, i32, i32
  }
  func.func @transform_1(%arg0: i32) -> (i32, i32) {
    %c0_i32 = arith.constant 0 : i32
    %c0_i32_0 = arith.constant 0 : i32
    %c0_i32_1 = arith.constant 0 : i32
    return %c0_i32, %c0_i32_0 : i32, i32
  }
  func.func @transform_2(%arg0: i32) -> (i32, i32) {
    %c0_i32 = arith.constant 0 : i32
    %c0_i32_0 = arith.constant 0 : i32
    %c0_i32_1 = arith.constant 0 : i32
    return %c0_i32, %c0_i32_0 : i32, i32
  }
  func.func @transform_3(%arg0: i32) -> (i32, i32, i32) {
    %c0_i32 = arith.constant 0 : i32
    %c0_i32_0 = arith.constant 0 : i32
    %c0_i32_1 = arith.constant 0 : i32
    return %arg0, %c0_i32, %c0_i32_0 : i32, i32, i32
  }
}

</mosaic_0001>

<bundles_post_ra>
// kernel: tpu_custom_call.1
= control target key start
LH: loop header
LB: loop body
LE: loop exit
PB: predicated region body
PF: predicated region fallthrough
CT: control target
= control target key end

     0   :  { %8 = vsyncpa [#allocation3], 0  ;;  %s2759_s0 = inlined_call_operand.hbm [shape: f32[2,32,1024], index: 0, kind: input, shape index: {}]   ;;  %s2760_s1 = inlined_call_operand.vmem [shape: f32[32,1], index: 1, kind: input, shape index: {}]   ;;  %s2761_s2 = inlined_call_operand.vmem [shape: f32[32,1], index: 2, kind: input, shape index: {}]   ;;  %s2762_s3 = inlined_call_operand.hbm [shape: f32[2,32,1024], index: 3, kind: output, shape index: {}]  }
   0x1   :  { %10 = vsyncpa [#allocation3 + $0x1], 0 }
   0x2   :  { %11 = vsyncpa [#allocation4], 0 }
   0x3   :  { %13 = vsyncpa [#allocation4 + $0x1], 0  ;;  %s1540_s12 = smov 0   ;;  %s1542_s13 = smov 0  }
   0x4   :  { %s1544_s14 = smov 0   ;;  %s1546_s15 = smov 0  }
   0x5 LB: > { %s1561_s16 = sadd.s32 4294967295, %s1511_s15   ;;  %s1334_s17 = sadd.s32 4294967294, %s1511_s15   ;;  %s1511_s15 = sphi %s1546_s15, %s2911_s15   ;;  %s1507_s14 = sphi %s1544_s14, %s2910_s14   ;;  %s1503_s13 = sphi %s1542_s13, %s2909_s13   ;;  %s1499_s12 = sphi %s1540_s12, %s2908_s12  }
   0x6   : > { %s1565_s18 = sadd.s32 1, %s1511_s15   ;;  %s26_s19 = sadd.s32 1, %s1507_s14 }
   0x7   : > { %s23_s20 = ssub.s32 %s1511_s15, %s1565_s18  ;;  %p33_p0 = scmp.ne.s32.totalorder %s1507_s14, %s1503_s13 }
   0x8   : > { %p24_p1 = scmp.eq.s32.totalorder %s23_s20, 0  ;;  %p34_p2 = scmp.eq.s32.totalorder %s1511_s15, 0 }
   0x9   : > { %p39_p3 = scmp.ne.s32.totalorder %s1503_s13, %s1499_s12  ;;  %p40_p4 = scmp.eq.s32.totalorder %s1561_s16, 0 }
   0xa   : > { %s1577_s21 = scalar_select %p24_p1, %s1507_s14, %s26_s19  }
   0xb   : > { %p1579_p5 = por %p34_p2, %p33_p0  ;;  %p1583_p6 = por %p40_p4, %p39_p3 }
   0xc   : > { %p105_p7 = scmp.eq.s32.totalorder %s1561_s16, 1  ;;  %p111_p8 = scmp.eq.s32.totalorder %s1334_s17, 1 }
   0xd   : > { %s2810_s23 = scalar_select %p1583_p6, 1, 0 }
   0xe   : > { %p1362_p10 = scmp.lt.s32.totalorder %s1511_s15, 2  ;;  %p1590_p11 = por %p105_p7, %p33_p0 }
   0xf   : > { %p1594_p12 = por %p111_p8, %p39_p3  ;;  %s137_s26 = sand.u32 1, %s1507_s14  }
  0x10   : > { %s2811_s24 = scalar_select %p1590_p11, 1, 0 }
  0x11   : > { %s2812_s25 = scalar_select %p1594_p12, 1, 0 }
  0x12   : > { %s1348_s27 = sshll.u32 %s1511_s15, 12  ;;  %s1337_s28 = sshll.u32 %s137_s26, 8 }
  0x13   : > { %s1603_s4 = scalar_lea.hbm %s2759_s0, %s1348_s27  ;;  %s141_s5 = scalar_lea.vmem [#allocation2], %s1337_s28 }
  0x14   : > { %s148_s6 = sshll.u32 %s141_s5, 4  ;;  %p1607_p13 = pnand %p1362_p10, %p1579_p5  ;;  %s1611_s6 = int_to_ptr.vmem [resolvable:$true] %s148_s6 }
  0x15   : > { %s1613_s8 = scalar_lea.sflag [#allocation3], %s137_s26  ;;  %s1419_s9 = scalar_lea.hbm %s1603_s4, 4096 }
  0x16   : > { %p1420_p0 = scmp.ne.s32.totalorder %s1603_s4, %s1419_s9  ;;  %p1421_p1 = pneg %p1607_p13 }
  0x17   : > { %s1424_s17 = scalar_lea.hbm %s2759_s0, 8192  ;;  %p1425_p4 = scmp.lt.s32.totalorder %s1603_s4, %s2759_s0 }
  0x18   : > { %p1422_p2 = pnand %p1421_p1, %p1420_p0  ;;  %p1426_p5 = scmp.lt.s32.totalorder %s1424_s17, %s1419_s9 }
  0x1a   : > { %p1423_p3 = pneg %p1422_p2  ;;  %p1427_p7 = por %p1426_p5, %p1425_p4 }
  0x1c   : > { %p1428_p8 = pnand %p1427_p7, %p1423_p3 }
  0x1e   : > { %1431 = shalt.err (!%p1428_p8)
}
  0x1f   : > { %s1432_s22 = scalar_lea.vmem %s1611_s6, 4096  ;;  %s1513_s26 = smov [#allocation2]  }
  0x20   : > { %p1433_p10 = scmp.ne.s32.totalorder %s1611_s6, %s1432_s22  ;;  %s1437_s27 = sshll.u32 %s1513_s26, 4  ;;  %s1438_s27 = int_to_ptr.vmem [resolvable:$false] %s1437_s27 }
  0x21   : > { %s1439_s28 = scalar_lea.vmem %s1438_s27, 8192  ;;  %p1440_p2 = scmp.lt.s32.totalorder %s1611_s6, %s1438_s27 }
  0x22   : > { %p1435_p9 = pnand %p1433_p10, %p1421_p1  ;;  %p1441_p12 = scmp.lt.s32.totalorder %s1439_s28, %s1432_s22 }
  0x24   : > { %p1436_p0 = pneg %p1435_p9  ;;  %p1442_p11 = por %p1441_p12, %p1440_p2 }
  0x26   : > { %p1443_p6 = pnand %p1442_p11, %p1436_p0 }
  0x28   : > { %1446 = shalt.err (!%p1443_p6)
}
  0x29   : > { %s1514_s29 = smov 1024   ;;  %s1515_s30 = smov 64  }
  0x2a   : > { %1357 = dma.hbm_to_vmem [thread:$0]  (!%p1607_p13), %s1603_s4, 4096, %s1611_s6, %s1613_s8, %s1514_s29, %s1514_s29, %s1515_s30  }
  0x2b   : > { %p1340_p9 = scmp.ge.s32.totalorder %s1511_s15, 1  ;;  %p156_p1 = scmp.lt.s32.totalorder %s1511_s15, 3 }
  0x2d   : > { %p157_p3 = pnand %p1340_p9, %p156_p1 }
  0x2f   : > { %160 = sbr.rel (%p157_p3) target bundleno = 552 (0x228), region = 32 }
  0x34   : > { %s1637_s5 = sand.u32 1, %s1503_s13   ;;  %p2814_p6 = scmp.ne.s32.totalorder %s2810_s23, 0 }
  0x35   : > { %s1341_s9 = sshll.u32 %s1637_s5, 8  ;;  %s163_s10 = scalar_lea.sflag [#allocation3], %s1637_s5 }
  0x36   : > { %s1643_s11 = scalar_lea.vmem [#allocation2], %s1341_s9 }
  0x37   : > { %1490 = dma.done.wait (%p2814_p6), %s163_s10, 4096  }
  0x38   : > { %1492 = vsyncadd (%p2814_p6), %s163_s10, 4294963200  ;;  %v1516_v0 = vmov 0   ;;  %v274_v1 = vld [vmem:[%s2760_s1] sm:$0xf]  ;;  %v1656_v3 = vld [vmem:[%s1643_s11 + $0x8] sm:$0xf] }
  0x39   : > { %1401 = vset.pattern.permute.xlu1 %v1516_v0  ;;  %1402 = vset.pattern.permute.xlu0 %v1516_v0  ;;  %v1653_v2 = vld [vmem:[%s1643_s11] sm:$0xf]  ;;  %vm197_vm0 = vcmask 1043456   ;;  %v1662_v5 = vld [vmem:[%s1643_s11 + $0x10] sm:$0xf]  ;;  %vm326_vm1 = vcmask 1047556  }
  0x3a   : > { %277 = vperm.xlu1 %1401, %v274_v1   ;;  %v288_v4 = vld [vmem:[%s2761_s2] sm:$0xf]  ;;  %v1665_v6 = vld [vmem:[%s1643_s11 + $0x18] sm:$0xf]  ;;  %v198_v7 = vsel %vm197_vm0, %v1653_v2, 0.0  ;;  %v199_v8 = vsel %vm197_vm0, %v1656_v3, 0.0 }
  0x3b   : > { %v201_v9 = vsel %vm197_vm0, %v1662_v5, 0.0  ;;  %v1674_v10 = vld [vmem:[%s1643_s11] sm:$0xf0]  ;;  %v1677_v11 = vld [vmem:[%s1643_s11 + $0x20] sm:$0xf]  ;;  %v200_v12 = vadd.f32 %v199_v8, %v198_v7  ;;  %v203_v15 = vsel %vm197_vm0, %v1665_v6, 0.0 }
  0x3c   : > { %v1680_v13 = vld [vmem:[%s1643_s11 + $0x8] sm:$0xf0]  ;;  %v424_v14 = vld [vmem:[%s2761_s2 + $0x4] sm:$0xf]  ;;  %v1688_v16 = vld [vmem:[%s1643_s11 + $0x10] sm:$0xf0] }
  0x3d   : > { %v327_v17 = vsel %vm326_vm1, %v1674_v10, 0.0  ;;  %v1693_v18 = vld [vmem:[%s1643_s11 + $0x28] sm:$0xf]  ;;  %v202_v19 = vadd.f32 %v201_v9, %v200_v12  ;;  %v1696_v20 = vld [vmem:[%s1643_s11 + $0x18] sm:$0xf0]  ;;  %v205_v23 = vsel %vm197_vm0, %v1677_v11, 0.0 }
  0x3e   : > { %291 = vperm.xlu1 %1401, %v288_v4   ;;  %v553_v21 = vld [vmem:[%s2761_s2 + $0x8] sm:$0xf]  ;;  %v1702_v22 = vld [vmem:[%s1643_s11 + $0x30] sm:$0xf]  ;;  %v328_v24 = vsel %vm326_vm1, %v1680_v13, 0.0  ;;  %v330_v25 = vsel %vm326_vm1, %v1688_v16, 0.0 }
  0x3f   : > { %v204_v26 = vadd.f32 %v203_v15, %v202_v19  ;;  %v1711_v27 = vld [vmem:[%s1643_s11 + $0x20] sm:$0xf0]  ;;  %v329_v28 = vadd.f32 %v328_v24, %v327_v17  ;;  %v1714_v29 = vld [vmem:[%s1643_s11 + $0x40] sm:$0xf]  ;;  %v1717_v30 = vld [vmem:[%s1643_s11 + $0x48] sm:$0xf] }
  0x40   : > { %v207_v31 = vsel %vm197_vm0, %v1693_v18, 0.0  ;;  %v332_v32 = vsel %vm326_vm1, %v1696_v20, 0.0  ;;  %v1724_v33 = vld [vmem:[%s1643_s11 + $0x50] sm:$0xf]  ;;  %v463_v34 = vsel %vm197_vm0, %v1714_v29, 0.0  ;;  %v209_v40 = vsel %vm197_vm0, %v1702_v22, 0.0 }
  0x41   : > { %v1729_v35 = vld [vmem:[%s1643_s11 + $0x38] sm:$0xf]  ;;  %v206_v36 = vadd.f32 %v205_v23, %v204_v26  ;;  %v1732_v37 = vld [vmem:[%s1643_s11 + $0x28] sm:$0xf0]  ;;  %v331_v38 = vadd.f32 %v330_v25, %v329_v28  ;;  %v334_v41 = vsel %vm326_vm1, %v1711_v27, 0.0  ;;  %v464_v42 = vsel %vm197_vm0, %v1717_v30, 0.0 }
  0x42   : > { %427 = vperm.xlu1 %1401, %v424_v14   ;;  %v1735_v39 = vld [vmem:[%s1643_s11 + $0x58] sm:$0xf]  ;;  %v466_v43 = vsel %vm197_vm0, %v1724_v33, 0.0  ;;  %v1746_v45 = vld [vmem:[%s1643_s11 + $0x30] sm:$0xf0]  ;;  %v465_v48 = vadd.f32 %v464_v42, %v463_v34  ;;  %v211_v49 = vsel %vm197_vm0, %v1729_v35, 0.0 }
  0x43   : > { %v208_v44 = vadd.f32 %v207_v31, %v206_v36  ;;  %v333_v46 = vadd.f32 %v332_v32, %v331_v38  ;;  %v1749_v47 = vld [vmem:[%s1643_s11 + $0x60] sm:$0xf]  ;;  %v1754_v50 = vld [vmem:[%s1643_s11 + $0x38] sm:$0xf0]  ;;  %v336_v51 = vsel %vm326_vm1, %v1732_v37, 0.0  ;;  %v468_v52 = vsel %vm197_vm0, %v1735_v39, 0.0 }
  0x44   : > { %v1761_v55 = vld [vmem:[%s1643_s11 + $0x68] sm:$0xf]  ;;  %v467_v56 = vadd.f32 %v466_v43, %v465_v48  ;;  %v1764_v57 = vld [vmem:[%s1643_s11 + $0x80] sm:$0xf0]  ;;  %v1767_v58 = vld [vmem:[%s1643_s11 + $0x88] sm:$0xf0] }
  0x45   : > { %v210_v53 = vadd.f32 %v209_v40, %v208_v44  ;;  %v335_v54 = vadd.f32 %v334_v41, %v333_v46  ;;  %v338_v59 = vsel %vm326_vm1, %v1746_v45, 0.0  ;;  %v470_v60 = vsel %vm197_vm0, %v1749_v47, 0.0  ;;  %v1774_v63 = vld [vmem:[%s1643_s11 + $0x70] sm:$0xf]  ;;  %v1785_v12 = vld [vmem:[%s1643_s11 + $0x78] sm:$0xf] }
  0x46   : > { %556 = vperm.xlu1 %1401, %v553_v21   ;;  %v469_v0 = vadd.f32 %v468_v52, %v467_v56  ;;  %v340_v1 = vsel %vm326_vm1, %v1754_v50, 0.0  ;;  %v472_v4 = vsel %vm197_vm0, %v1761_v55, 0.0  ;;  %v855_v7 = vsel %vm326_vm1, %v1764_v57, 0.0  ;;  %v1788_v15 = vld [vmem:[%s1643_s11 + $0x90] sm:$0xf0]  ;;  %s2485_s4 = scalar_lea.vmem [#allocation5], %s1341_s9 }
  0x47   : > { %v212_v61 = vadd.f32 %v211_v49, %v210_v53  ;;  %v337_v62 = vadd.f32 %v336_v51, %v335_v54  ;;  %v856_v8 = vsel %vm326_vm1, %v1767_v58, 0.0  ;;  %v474_v17 = vsel %vm197_vm0, %v1774_v63, 0.0  ;;  %v1797_v28 = vld [vmem:[%s1643_s11 + $0x98] sm:$0xf0]  ;;  %v1802_v36 = vld [vmem:[%s1643_s11 + $0xa0] sm:$0xf0] }
  0x48   : > { %v471_v14 = vadd.f32 %v470_v60, %v469_v0  ;;  %v857_v23 = vadd.f32 %v856_v8, %v855_v7  ;;  %v476_v24 = vsel %vm197_vm0, %v1785_v12, 0.0  ;;  %v858_v25 = vsel %vm326_vm1, %v1788_v15, 0.0  ;;  %v1807_v41 = vld [vmem:[%s1643_s11 + $0xa8] sm:$0xf0]  ;;  %v1812_v44 = vld [vmem:[%s1643_s11 + $0xb0] sm:$0xf0] }
  0x49   : > { %213 = vadd.xlane.f32.xlu0 %v212_v61  ;;  %v339_v9 = vadd.f32 %v338_v59, %v337_v62  ;;  %v860_v34 = vsel %vm326_vm1, %v1797_v28, 0.0  ;;  %v862_v40 = vsel %vm326_vm1, %v1802_v36, 0.0  ;;  %v864_v43 = vsel %vm326_vm1, %v1807_v41, 0.0  ;;  %v1817_v49 = vld [vmem:[%s1643_s11 + $0xb8] sm:$0xf0]  ;;  %s1349_s9 = sshll.u32 %s1561_s16, 12 }
  0x4a   : > { %v473_v21 = vadd.f32 %v472_v4, %v471_v14  ;;  %v859_v32 = vadd.f32 %v858_v25, %v857_v23  ;;  %v866_v48 = vsel %vm326_vm1, %v1812_v44, 0.0  ;;  %v868_v52 = vsel %vm326_vm1, %v1817_v49, 0.0  ;;  %v409_v54 = vld [vmem:[%s2760_s1 + $0x4] sm:$0xf]  ;;  %v539_v56 = vld [vmem:[%s2760_s1 + $0x8] sm:$0xf]  ;;  %s2706_s7 = scalar_lea.hbm %s2762_s3, %s1349_s9 }
  0x4b   : > { %v341_v19 = vadd.f32 %v340_v1, %v339_v9  ;;  %v1828_v59 = vld [vmem:[%s1643_s11 + $0x40] sm:$0xf0]  ;;  %v1831_v60 = vld [vmem:[%s1643_s11 + $0x48] sm:$0xf0]  ;;  %v1838_v0 = vld [vmem:[%s1643_s11 + $0x50] sm:$0xf0] }
  0x4c   : > { %v475_v26 = vadd.f32 %v474_v17, %v473_v21  ;;  %v861_v38 = vadd.f32 %v860_v34, %v859_v32  ;;  %v591_v61 = vsel %vm326_vm1, %v1828_v59, 0.0  ;;  %v592_v62 = vsel %vm326_vm1, %v1831_v60, 0.0  ;;  %v1841_v1 = vld [vmem:[%s1643_s11 + $0xc0] sm:$0xf0]  ;;  %v1844_v4 = vld [vmem:[%s1643_s11 + $0xc8] sm:$0xf0] }
  0x4d   : > { %342 = vadd.xlane.f32.xlu0 %v341_v19  ;;  %2815 = vst [vmem:[#allocation8_spill] sm:$0xff] %v1841_v1  ;;  %2816 = vst [vmem:[#allocation9_spill] sm:$0xff] %v1844_v4  ;;  %v593_v7 = vadd.f32 %v592_v62, %v591_v61  ;;  %v1847_v8 = vld [vmem:[%s1643_s11 + $0x58] sm:$0xf0]  ;;  %v594_v9 = vsel %vm326_vm1, %v1838_v0, 0.0  ;;  %v1119_v14 = vsel %vm326_vm1, %v1841_v1, 0.0 }
  0x4e   : > { %v477_v31 = vadd.f32 %v476_v24, %v475_v26  ;;  %v863_v42 = vadd.f32 %v862_v40, %v861_v38  ;;  %v1120_v17 = vsel %vm326_vm1, %v1844_v4, 0.0  ;;  %v1856_v19 = vld [vmem:[%s1643_s11 + $0xd0] sm:$0xf0]  ;;  %v1859_v21 = vld [vmem:[%s1643_s11 + $0x80] sm:$0xf]  ;;  %s1261_s6 = sshll.u32 %s2485_s4, 4  ;;  %s2708_s6 = int_to_ptr.vmem [resolvable:$true] %s1261_s6 }
  0x4f   : > { %2817 = vst [vmem:[#allocation10_spill] sm:$0xff] %v1856_v19  ;;  %v1862_v23 = vld [vmem:[%s1643_s11 + $0x88] sm:$0xf]  ;;  %v1865_v24 = vld [vmem:[%s1643_s11 + $0x60] sm:$0xf0]  ;;  %v595_v25 = vadd.f32 %v594_v9, %v593_v7  ;;  %v1121_v26 = vadd.f32 %v1120_v17, %v1119_v14  ;;  %v1122_v34 = vsel %vm326_vm1, %v1856_v19, 0.0 }
  0x50   : > { %v865_v46 = vadd.f32 %v864_v43, %v863_v42  ;;  %v1870_v32 = vld [vmem:[%s1643_s11 + $0xd8] sm:$0xf0]  ;;  %v727_v38 = vsel %vm197_vm0, %v1859_v21, 0.0  ;;  %v728_v40 = vsel %vm197_vm0, %v1862_v23, 0.0  ;;  %v1879_v42 = vld [vmem:[%s1643_s11 + $0x90] sm:$0xf] }
  0x51   : > { %478 = vadd.xlane.f32.xlu0 %v477_v31  ;;  %v596_v31 = vsel %vm326_vm1, %v1847_v8, 0.0  ;;  %2818 = vst [vmem:[#allocation11_spill] sm:$0xff] %v1870_v32  ;;  %v1882_v43 = vld [vmem:[%s1643_s11 + $0xc0] sm:$0xf]  ;;  %v730_v61 = vsel %vm197_vm0, %v1879_v42, 0.0  ;;  %s1248_s8 = scalar_lea.sflag [#allocation4], %s1637_s5 }
  0x52   : > { %v867_v51 = vadd.f32 %v866_v48, %v865_v46  ;;  %2819 = vst [vmem:[#allocation12_spill] sm:$0xff] %v1882_v43  ;;  %v1885_v46 = vld [vmem:[%s1643_s11 + $0xc8] sm:$0xf]  ;;  %v597_v48 = vadd.f32 %v596_v31, %v595_v25  ;;  %v991_v62 = vsel %vm197_vm0, %v1882_v43, 0.0  ;;  %v1901_v9 = vld [vmem:[%s1643_s11 + $0xe0] sm:$0xf0] }
  0x53   : > { %2820 = vst [vmem:[#allocation13_spill] sm:$0xff] %v1885_v46  ;;  %v992_v7 = vsel %vm197_vm0, %v1885_v46, 0.0  ;;  %2821 = vst [vmem:[#allocation14_spill] sm:$0xff] %v1901_v9  ;;  %v1904_v14 = vld [vmem:[%s1643_s11 + $0x98] sm:$0xf]  ;;  %s1447_s17 = scalar_lea.vmem %s2708_s6, 4096 }
  0x54   : > { %v869_v53 = vadd.f32 %v868_v52, %v867_v51  ;;  %v598_v51 = vsel %vm326_vm1, %v1865_v24, 0.0  ;;  %v1123_v52 = vadd.f32 %v1122_v34, %v1121_v26  ;;  %v1907_v17 = vld [vmem:[%s1643_s11 + $0xd0] sm:$0xf]  ;;  %v993_v34 = vadd.f32 %v992_v7, %v991_v62  ;;  %v1930_v4 = vld [vmem:[%s1643_s11 + $0x78] sm:$0xf0]  ;;  %p1448_p11 = scmp.ne.s32.totalorder %s2708_s6, %s1447_s17  ;;  %p2905_p12 = scmp.ne.s32.totalorder %s2811_s24, 0 }
  0x55   : > { %2822 = vst [vmem:[#allocation15_spill] sm:$0xff] %v1907_v17  ;;  %v599_v25 = vadd.f32 %v598_v51, %v597_v48  ;;  %v732_v19 = vsel %vm197_vm0, %v1904_v14, 0.0  ;;  %v994_v48 = vsel %vm197_vm0, %v1907_v17, 0.0  ;;  %v1921_v51 = vld [vmem:[%s1643_s11 + $0xe8] sm:$0xf0]  ;;  %2827 = vst [vmem:[#allocation20_spill] sm:$0xff] %v1930_v4 }
  0x56   : > { %2824 = vst [vmem:[#allocation17_spill] sm:$0xff] %v1921_v51  ;;  %v995_v7 = vadd.f32 %v994_v48, %v993_v34  ;;  %v1128_v1 = vsel %vm326_vm1, %v1921_v51, 0.0  ;;  %v604_v51 = vsel %vm326_vm1, %v1930_v4, 0.0  ;;  %v1976_v4 = vld [vmem:[%s1643_s11 + $0xf0] sm:$0xf]  ;;  %p1449_p13 = pnand %p1448_p11, %p2905_p12  ;;  %s1517_s19 = smov [#allocation5]  }
  0x57   : > { %2832 = vst [vmem:[#allocation25_spill] sm:$0xff] %v1976_v4  ;;  %s1451_s20 = sshll.u32 %s1517_s19, 4  ;;  %s1452_s20 = int_to_ptr.vmem [resolvable:$false] %s1451_s20 }
  0x58   : > { %p1450_p4 = pneg %p1449_p13  ;;  %s1453_s22 = scalar_lea.vmem %s1452_s20, 8192 }
  0x59   : > { %p1454_p5 = scmp.lt.s32.totalorder %s2708_s6, %s1452_s20  ;;  %p1455_p7 = scmp.lt.s32.totalorder %s1453_s22, %s1447_s17 }
  0x5b   : > { %p1456_p8 = por %p1455_p7, %p1454_p5 }
  0x5d   : > { %p1457_p10 = pnand %p1456_p8, %p1450_p4 }
  0x67   : > { %412 = vperm.xlu0 %1402, %v409_v54   ;;  %v1890_v54 = vld [vmem:[%s1643_s11 + $0x68] sm:$0xf0] }
  0x6a   : > { %870 = vadd.xlane.f32.xlu1 %v869_v53  ;;  %v729_v53 = vadd.f32 %v728_v40, %v727_v38  ;;  %v1910_v38 = vld [vmem:[%s1643_s11 + $0x70] sm:$0xf0]  ;;  %v600_v40 = vsel %vm326_vm1, %v1890_v54, 0.0 }
  0x6b   : > { %542 = vperm.xlu0 %1402, %v539_v56   ;;  %v1124_v56 = vsel %vm326_vm1, %v1870_v32, 0.0  ;;  %2823 = vst [vmem:[#allocation16_spill] sm:$0xff] %v1910_v38  ;;  %v1126_v32 = vsel %vm326_vm1, %v1901_v9, 0.0  ;;  %v602_v9 = vsel %vm326_vm1, %v1910_v38, 0.0 }
  0x6c   : > { %v1125_v26 = vadd.f32 %v1124_v56, %v1123_v52  ;;  %v731_v31 = vadd.f32 %v730_v61, %v729_v53  ;;  %v1924_v52 = vld [vmem:[%s1643_s11 + $0xa0] sm:$0xf]  ;;  %v1927_v53 = vld [vmem:[%s1643_s11 + $0xd8] sm:$0xf]  ;;  %v601_v56 = vadd.f32 %v600_v40, %v599_v25 }
  0x6d   : > { %2825 = vst [vmem:[#allocation18_spill] sm:$0xff] %v1924_v52  ;;  %2826 = vst [vmem:[#allocation19_spill] sm:$0xff] %v1927_v53  ;;  %v734_v17 = vsel %vm197_vm0, %v1924_v52, 0.0  ;;  %v996_v25 = vsel %vm197_vm0, %v1927_v53, 0.0  ;;  %v1958_v52 = vld [vmem:[%s1643_s11 + $0xf8] sm:$0xf0] }
  0x6e   : > { %v1127_v61 = vadd.f32 %v1126_v32, %v1125_v26  ;;  %v733_v62 = vadd.f32 %v732_v19, %v731_v31  ;;  %v1941_v32 = vld [vmem:[%s1643_s11 + $0xf0] sm:$0xf0]  ;;  %v1944_v19 = vld [vmem:[%s1643_s11 + $0xa8] sm:$0xf]  ;;  %v1947_v26 = vld [vmem:[%s1643_s11 + $0xe0] sm:$0xf]  ;;  %v603_v31 = vadd.f32 %v602_v9, %v601_v56  ;;  %v997_v48 = vadd.f32 %v996_v25, %v995_v7 }
  0x6f   : > { %2828 = vst [vmem:[#allocation21_spill] sm:$0xff] %v1941_v32  ;;  %2829 = vst [vmem:[#allocation22_spill] sm:$0xff] %v1944_v19  ;;  %v1130_v46 = vsel %vm326_vm1, %v1941_v32, 0.0  ;;  %v736_v53 = vsel %vm197_vm0, %v1944_v19, 0.0  ;;  %v998_v43 = vsel %vm197_vm0, %v1947_v26, 0.0  ;;  %v1132_v7 = vsel %vm326_vm1, %v1958_v52, 0.0 }
  0x70   : > { %2830 = vst [vmem:[#allocation23_spill] sm:$0xff] %v1947_v26  ;;  %v1129_v34 = vadd.f32 %v1128_v1, %v1127_v61  ;;  %v735_v40 = vadd.f32 %v734_v17, %v733_v62  ;;  %2831 = vst [vmem:[#allocation24_spill] sm:$0xff] %v1958_v52  ;;  %v1961_v9 = vld [vmem:[%s1643_s11 + $0xb0] sm:$0xf]  ;;  %v1964_v1 = vld [vmem:[%s1643_s11 + $0xe8] sm:$0xf]  ;;  %v605_v17 = vadd.f32 %v604_v51, %v603_v31 }
  0x71   : > { %v999_v62 = vadd.f32 %v998_v43, %v997_v48  ;;  %v738_v25 = vsel %vm197_vm0, %v1961_v9, 0.0  ;;  %v1000_v32 = vsel %vm197_vm0, %v1964_v1, 0.0  ;;  %v1973_v26 = vld [vmem:[%s1643_s11 + $0xb8] sm:$0xf] }
  0x72   : > { %v1131_v56 = vadd.f32 %v1130_v46, %v1129_v34  ;;  %v737_v61 = vadd.f32 %v736_v53, %v735_v40  ;;  %v740_v43 = vsel %vm197_vm0, %v1973_v26, 0.0  ;;  %v1002_v46 = vsel %vm197_vm0, %v1976_v4, 0.0  ;;  %v1983_v53 = vld [vmem:[%s1643_s11 + $0xf8] sm:$0xf] }
  0x73   : > { %v1001_v51 = vadd.f32 %v1000_v32, %v999_v62  ;;  %v1004_v40 = vsel %vm197_vm0, %v1983_v53, 0.0 }
  0x74   : > { %v1133_v19 = vadd.f32 %v1132_v7, %v1131_v56  ;;  %v739_v38 = vadd.f32 %v738_v25, %v737_v61 }
  0x75   : > { %v1003_v34 = vadd.f32 %v1002_v46, %v1001_v51 }
  0x76   : > { %v741_v31 = vadd.f32 %v740_v43, %v739_v38 }
  0x77   : > { %v1005_v48 = vadd.f32 %v1004_v40, %v1003_v34 }
  0x8a   : > { %606 = vadd.xlane.f32.xlu0 %v605_v17 }
  0x8e   : > { %1134 = vadd.xlane.f32.xlu0 %v1133_v19 }
  0x92   : > { %742 = vadd.xlane.f32.xlu0 %v741_v31 }
  0x96   : > { %1006 = vadd.xlane.f32.xlu0 %v1005_v48 }
  0xb5   : > { %v1988_v4 = vpop.permute.xlu1 %277 }
  0xb6   : > { %2833 = vst [vmem:[#allocation26_spill] sm:$0xff] %v1988_v4 }
  0xb9   : > { %v1991_v48 = vpop.permute.xlu1 %291 }
  0xba   : > { %2834 = vst [vmem:[#allocation27_spill] sm:$0xff] %v1991_v48 }
  0xd2   : > { %v214_v17 = vpop.xlane.xlu0 %213 }
  0xd3   : > { %v215_v32 = vsel %vm197_vm0, %v214_v17, 0.0 }
  0xd4   : > { %v216_v56 = vrot.slane %v215_v32, 4 }
  0xd6   : > { %v217_v61 = vadd.f32 %v216_v56, %v215_v32  ;;  %v343_v62 = vpop.xlane.xlu0 %342 }
  0xd7   : > { %v345_v46 = vrot.slane %v343_v62, 4 }
  0xd8   : > { %v218_v7 = vrot.slane %v217_v61, 2 }
  0xd9   : > { %v347_v17 = vsel %vm197_vm0, %v345_v46, 0.0 }
  0xda   : > { %v219_v25 = vadd.f32 %v218_v7, %v217_v61  ;;  %v479_v52 = vpop.xlane.xlu0 %478 }
  0xdb   : > { %v480_v38 = vsel %vm197_vm0, %v479_v52, 0.0 }
  0xdc   : > { %v220_v19 = vrot.slane %v219_v25, 1  ;;  %v481_v51 = vrot.slane %v480_v38, 4 }
  0xde   : > { %v221_v43 = vadd.f32 %v220_v19, %v219_v25  ;;  %v482_v31 = vadd.f32 %v481_v51, %v480_v38  ;;  %v348_v25 = vrot.slane %v347_v17, 4 }
  0xe0   : > { %v222_v34 = vmul.f32 0.00024414063, %v221_v43  ;;  %v483_v40 = vrot.slane %v482_v31, 2 }
  0xe2   : > { %v484_v32 = vadd.f32 %v483_v40, %v482_v31  ;;  %v1995_v56 = vsub.f32 %v1653_v2, %v222_v34  ;;  %v1998_v61 = vsub.f32 %v1656_v3, %v222_v34  ;;  %v2001_v52 = vsub.f32 %v1662_v5, %v222_v34  ;;  %v2013_v3 = vpop.permute.xlu1 %427 }
  0xe3   : > { %v2004_v62 = vsub.f32 %v1665_v6, %v222_v34  ;;  %v2007_v38 = vsub.f32 %v1677_v11, %v222_v34  ;;  %2835 = vst [vmem:[#allocation28_spill] sm:$0xff] %v2013_v3  ;;  %v2019_v46 = vsub.f32 %v1693_v18, %v222_v34  ;;  %v349_v40 = vadd.f32 %v348_v25, %v347_v17 }
  0xe4   : > { %v485_v7 = vrot.slane %v484_v32, 1  ;;  %v231_v19 = vmul.f32 %v1995_v56, %v1995_v56  ;;  %v232_v2 = vmul.f32 %v1998_v61, %v1998_v61  ;;  %v233_v5 = vmul.f32 %v2001_v52, %v2001_v52 }
  0xe5   : > { %v234_v11 = vmul.f32 %v2004_v62, %v2004_v62  ;;  %v2025_v48 = vsub.f32 %v1702_v22, %v222_v34  ;;  %v2040_v17 = vsub.f32 %v1729_v35, %v222_v34  ;;  %v350_v34 = vrot.slane %v349_v40, 2 }
  0xe6   : > { %v486_v51 = vadd.f32 %v485_v7, %v484_v32  ;;  %v239_v43 = vsel %vm197_vm0, %v231_v19, 0.0  ;;  %v240_v31 = vsel %vm197_vm0, %v232_v2, 0.0  ;;  %v235_v32 = vmul.f32 %v2007_v38, %v2007_v38  ;;  %v2045_v2 = vpop.permute.xlu1 %556 }
  0xe7   : > { %v241_v7 = vadd.f32 %v240_v31, %v239_v43  ;;  %v242_v3 = vsel %vm197_vm0, %v233_v5, 0.0  ;;  %2839 = vst [vmem:[#allocation32_spill] sm:$0xff] %v2040_v17  ;;  %2841 = vst [vmem:[#allocation34_spill] sm:$0xff] %v2045_v2  ;;  %v236_v5 = vmul.f32 %v2019_v46, %v2019_v46 }
  0xe8   : > { %v487_v6 = vmul.f32 0.00024414063, %v486_v51  ;;  %v246_v31 = vsel %vm197_vm0, %v235_v32, 0.0 }
  0xe9   : > { %v243_v22 = vadd.f32 %v242_v3, %v241_v7  ;;  %v237_v3 = vmul.f32 %v2025_v48, %v2025_v48 }
  0xea   : > { %v2031_v19 = vsub.f32 %v1714_v29, %v487_v6  ;;  %v2034_v18 = vsub.f32 %v1717_v30, %v487_v6  ;;  %v2037_v51 = vsub.f32 %v1724_v33, %v487_v6  ;;  %v2043_v25 = vsub.f32 %v1735_v39, %v487_v6 }
  0xeb   : > { %v244_v29 = vsel %vm197_vm0, %v234_v11, 0.0  ;;  %v2055_v35 = vsub.f32 %v1749_v47, %v487_v6  ;;  %v2064_v2 = vsub.f32 %v1761_v55, %v487_v6 }
  0xec   : > { %2836 = vst [vmem:[#allocation29_spill] sm:$0xff] %v2031_v19  ;;  %2837 = vst [vmem:[#allocation30_spill] sm:$0xff] %v2034_v18  ;;  %v496_v30 = vmul.f32 %v2031_v19, %v2031_v19  ;;  %v497_v33 = vmul.f32 %v2034_v18, %v2034_v18  ;;  %v245_v43 = vadd.f32 %v244_v29, %v243_v22  ;;  %v248_v18 = vsel %vm197_vm0, %v236_v5, 0.0 }
  0xed   : > { %2838 = vst [vmem:[#allocation31_spill] sm:$0xff] %v2037_v51  ;;  %2840 = vst [vmem:[#allocation33_spill] sm:$0xff] %v2043_v25  ;;  %v498_v39 = vmul.f32 %v2037_v51, %v2037_v51  ;;  %v499_v22 = vmul.f32 %v2043_v25, %v2043_v25  ;;  %v238_v51 = vmul.f32 %v2040_v17, %v2040_v17  ;;  %v250_v25 = vsel %vm197_vm0, %v237_v3, 0.0 }
  0xee   : > { %v504_v11 = vsel %vm197_vm0, %v496_v30, 0.0  ;;  %v247_v7 = vadd.f32 %v246_v31, %v245_v43  ;;  %v505_v47 = vsel %vm197_vm0, %v497_v33, 0.0  ;;  %v2073_v19 = vsub.f32 %v1774_v63, %v487_v6 }
  0xef   : > { %v506_v32 = vadd.f32 %v505_v47, %v504_v11  ;;  %v500_v55 = vmul.f32 %v2055_v35, %v2055_v35  ;;  %v507_v31 = vsel %vm197_vm0, %v498_v39, 0.0  ;;  %v2080_v33 = vsub.f32 %v1785_v12, %v487_v6 }
  0xf0   : > { %v249_v43 = vadd.f32 %v248_v18, %v247_v7  ;;  %v501_v63 = vmul.f32 %v2064_v2, %v2064_v2  ;;  %v509_v11 = vsel %vm197_vm0, %v499_v22, 0.0  ;;  %v252_v7 = vsel %vm197_vm0, %v238_v51, 0.0 }
  0xf1   : > { %v508_v4 = vadd.f32 %v507_v31, %v506_v32  ;;  %v502_v3 = vmul.f32 %v2073_v19, %v2073_v19  ;;  %v511_v12 = vsel %vm197_vm0, %v500_v55, 0.0 }
  0xf2   : > { %v251_v5 = vadd.f32 %v250_v25, %v249_v43  ;;  %v503_v25 = vmul.f32 %v2080_v33, %v2080_v33 }
  0xf3   : > { %v871_v29 = vpop.xlane.xlu1 %870  ;;  %v510_v47 = vadd.f32 %v509_v11, %v508_v4  ;;  %v515_v4 = vsel %vm197_vm0, %v502_v3, 0.0 }
  0xf4   : > { %v873_v30 = vrot.slane %v871_v29, 4  ;;  %v351_v29 = vadd.f32 %v350_v34, %v349_v40  ;;  %v253_v39 = vadd.f32 %v252_v7, %v251_v5  ;;  %v517_v34 = vsel %vm197_vm0, %v503_v25, 0.0 }
  0xf5   : > { %v512_v32 = vadd.f32 %v511_v12, %v510_v47 }
  0xf6   : > { %v875_v17 = vsel %vm197_vm0, %v873_v30, 0.0  ;;  %254 = vadd.xlane.f32.xlu0 %v253_v39  ;;  %v513_v30 = vsel %vm197_vm0, %v501_v63, 0.0  ;;  %v352_v31 = vrot.slane %v351_v29, 1 }
  0xf7   : > { %v876_v18 = vrot.slane %v875_v17, 4  ;;  %v514_v43 = vadd.f32 %v513_v30, %v512_v32 }
  0xf8   : > { %v353_v55 = vadd.f32 %v352_v31, %v351_v29 }
  0xf9   : > { %v877_v6 = vadd.f32 %v876_v18, %v875_v17  ;;  %v516_v51 = vadd.f32 %v515_v4, %v514_v43 }
  0xfa   : > { %v2095_v7 = vmul.f32 0.00024414063, %v353_v55 }
  0xfb   : > { %v878_v22 = vrot.slane %v877_v6, 2  ;;  %v518_v11 = vadd.f32 %v517_v34, %v516_v51 }
  0xfd   : > { %v879_v40 = vadd.f32 %v878_v22, %v877_v6  ;;  %519 = vadd.xlane.f32.xlu1 %v518_v11  ;;  %v2156_v11 = vsub.f32 %v1688_v16, %v2095_v7 }
  0xff   : > { %v880_v5 = vrot.slane %v879_v40, 1  ;;  %2842 = vst [vmem:[#allocation35_spill] sm:$0xff] %v2156_v11  ;;  %v365_v16 = vmul.f32 %v2156_v11, %v2156_v11 }
 0x101   : > { %v881_v17 = vadd.f32 %v880_v5, %v879_v40 }
 0x103   : > { %v882_v18 = vmul.f32 0.00024414063, %v881_v17 }
 0x105   : > { %v2098_v47 = vsub.f32 %v1764_v57, %v882_v18  ;;  %v2101_v63 = vsub.f32 %v1767_v58, %v882_v18  ;;  %v2104_v39 = vsub.f32 %v1788_v15, %v882_v18  ;;  %v2107_v3 = vsub.f32 %v1797_v28, %v882_v18 }
 0x106   : > { %v2110_v12 = vsub.f32 %v1802_v36, %v882_v18  ;;  %v2113_v29 = vsub.f32 %v1807_v41, %v882_v18  ;;  %v2124_v28 = vsub.f32 %v1812_v44, %v882_v18  ;;  %v2128_v36 = vsub.f32 %v1674_v10, %v2095_v7 }
 0x107   : > { %v891_v6 = vmul.f32 %v2098_v47, %v2098_v47  ;;  %v892_v57 = vmul.f32 %v2101_v63, %v2101_v63  ;;  %v893_v58 = vmul.f32 %v2104_v39, %v2104_v39  ;;  %v894_v15 = vmul.f32 %v2107_v3, %v2107_v3 }
 0x108   : > { %v2132_v41 = vsub.f32 %v1680_v13, %v2095_v7  ;;  %v895_v32 = vmul.f32 %v2110_v12, %v2110_v12  ;;  %v2140_v44 = vsub.f32 %v1817_v49, %v882_v18  ;;  %v896_v10 = vmul.f32 %v2113_v29, %v2113_v29  ;;  %v2145_v13 = vpop.permute.xlu0 %412 }
 0x109   : > { %v899_v25 = vsel %vm326_vm1, %v891_v6, 0.0  ;;  %v900_v30 = vsel %vm326_vm1, %v892_v57, 0.0  ;;  %v902_v22 = vsel %vm326_vm1, %v893_v58, 0.0  ;;  %v904_v31 = vsel %vm326_vm1, %v894_v15, 0.0 }
 0x10a   : > { %v901_v43 = vadd.f32 %v900_v30, %v899_v25  ;;  %v363_v40 = vmul.f32 %v2128_v36, %v2128_v36  ;;  %v364_v51 = vmul.f32 %v2132_v41, %v2132_v41  ;;  %v897_v34 = vmul.f32 %v2124_v28, %v2124_v28 }
 0x10b   : > { %v906_v49 = vsel %vm326_vm1, %v895_v32, 0.0  ;;  %v898_v55 = vmul.f32 %v2140_v44, %v2140_v44  ;;  %v908_v17 = vsel %vm326_vm1, %v896_v10, 0.0  ;;  %v2168_v25 = vsub.f32 %v1696_v20, %v2095_v7 }
 0x10c   : > { %v903_v4 = vadd.f32 %v902_v22, %v901_v43  ;;  %v371_v6 = vsel %vm326_vm1, %v363_v40, 0.0  ;;  %v372_v57 = vsel %vm326_vm1, %v364_v51, 0.0  ;;  %v910_v58 = vsel %vm326_vm1, %v897_v34, 0.0  ;;  %v2164_v15 = vpop.permute.xlu0 %542 }
 0x10d   : > { %2843 = vst [vmem:[#allocation36_spill] sm:$0xff] %v2168_v25  ;;  %v912_v30 = vsel %vm326_vm1, %v898_v55, 0.0  ;;  %v373_v22 = vadd.f32 %v372_v57, %v371_v6  ;;  %v366_v40 = vmul.f32 %v2168_v25, %v2168_v25  ;;  %v374_v51 = vsel %vm326_vm1, %v365_v16, 0.0 }
 0x10e   : > { %v905_v5 = vadd.f32 %v904_v31, %v903_v4  ;;  %v2175_v4 = vsub.f32 %v1711_v27, %v2095_v7 }
 0x10f   : > { %v375_v34 = vadd.f32 %v374_v51, %v373_v22 }
 0x110   : > { %v907_v18 = vadd.f32 %v906_v49, %v905_v5  ;;  %2844 = vst [vmem:[#allocation37_spill] sm:$0xff] %v2175_v4  ;;  %v367_v27 = vmul.f32 %v2175_v4, %v2175_v4 }
 0x112   : > { %v909_v32 = vadd.f32 %v908_v17, %v907_v18  ;;  %v2183_v17 = vsub.f32 %v1732_v37, %v2095_v7  ;;  %v376_v18 = vsel %vm326_vm1, %v366_v40, 0.0 }
 0x113   : > { %v607_v10 = vpop.xlane.xlu0 %606  ;;  %v377_v57 = vadd.f32 %v376_v18, %v375_v34 }
 0x114   : > { %v911_v43 = vadd.f32 %v910_v58, %v909_v32  ;;  %v609_v20 = vrot.slane %v607_v10, 4  ;;  %2845 = vst [vmem:[#allocation38_spill] sm:$0xff] %v2183_v17  ;;  %v378_v10 = vsel %vm326_vm1, %v367_v27, 0.0  ;;  %v2201_v27 = vsub.f32 %v1754_v50, %v2095_v7 }
 0x115   : > { %v379_v40 = vadd.f32 %v378_v10, %v377_v57 }
 0x116   : > { %v913_v31 = vadd.f32 %v912_v30, %v911_v43  ;;  %v611_v49 = vsel %vm197_vm0, %v609_v20, 0.0  ;;  %v368_v43 = vmul.f32 %v2183_v17, %v2183_v17 }
 0x117   : > { %v612_v5 = vrot.slane %v611_v49, 4  ;;  %v1135_v55 = vpop.xlane.xlu0 %1134 }
 0x118   : > { %914 = vadd.xlane.f32.xlu0 %v913_v31  ;;  %v1137_v6 = vrot.slane %v1135_v55, 4  ;;  %v2195_v31 = vsub.f32 %v1746_v45, %v2095_v7 }
 0x119   : > { %v613_v58 = vadd.f32 %v612_v5, %v611_v49 }
 0x11a   : > { %v1139_v32 = vsel %vm197_vm0, %v1137_v6, 0.0  ;;  %2846 = vst [vmem:[#allocation39_spill] sm:$0xff] %v2195_v31  ;;  %v380_v6 = vsel %vm326_vm1, %v368_v43, 0.0  ;;  %v369_v45 = vmul.f32 %v2195_v31, %v2195_v31  ;;  %v370_v43 = vmul.f32 %v2201_v27, %v2201_v27 }
 0x11b   : > { %v614_v16 = vrot.slane %v613_v58, 2  ;;  %v1140_v30 = vrot.slane %v1139_v32, 4  ;;  %v743_v22 = vpop.xlane.xlu0 %742 }
 0x11c   : > { %v744_v37 = vsel %vm197_vm0, %v743_v22, 0.0  ;;  %v381_v22 = vadd.f32 %v380_v6, %v379_v40  ;;  %v673_v40 = vld [vmem:[%s2760_s1 + $0xc] sm:$0xf] }
 0x11d   : > { %v615_v51 = vadd.f32 %v614_v16, %v613_v58  ;;  %v1141_v20 = vadd.f32 %v1140_v30, %v1139_v32  ;;  %v745_v34 = vrot.slane %v744_v37, 4 }
 0x11f   : > { %v616_v49 = vrot.slane %v615_v51, 1  ;;  %v1142_v5 = vrot.slane %v1141_v20, 2  ;;  %v746_v55 = vadd.f32 %v745_v34, %v744_v37  ;;  %v1007_v18 = vpop.xlane.xlu0 %1006 }
 0x120   : > { %v1008_v17 = vsel %vm197_vm0, %v1007_v18, 0.0  ;;  %v382_v18 = vsel %vm326_vm1, %v369_v45, 0.0 }
 0x121   : > { %v617_v57 = vadd.f32 %v616_v49, %v615_v51  ;;  %v1143_v58 = vadd.f32 %v1142_v5, %v1141_v20  ;;  %v747_v32 = vrot.slane %v746_v55, 2  ;;  %v1009_v16 = vrot.slane %v1008_v17, 4 }
 0x122   : > { %v383_v7 = vadd.f32 %v382_v18, %v381_v22  ;;  %v384_v51 = vsel %vm326_vm1, %v370_v43, 0.0 }
 0x123   : > { %v1144_v30 = vrot.slane %v1143_v58, 1  ;;  %v748_v10 = vadd.f32 %v747_v32, %v746_v55  ;;  %v1010_v37 = vadd.f32 %v1009_v16, %v1008_v17  ;;  %v618_v34 = vmul.f32 0.00024414063, %v617_v57  ;;  %v2852_v57 = vld [vmem:[#allocation16_spill] sm:$0xff]  ;;  %v2854_v32 = vld [vmem:[#allocation22_spill] sm:$0xff] }
 0x124   : > { %v2215_v5 = vadd.f32 %v384_v51, %v383_v7 }
 0x125   : > { %v749_v4 = vrot.slane %v748_v10, 1  ;;  %v1011_v50 = vrot.slane %v1010_v37, 2  ;;  %v1145_v25 = vadd.f32 %v1144_v30, %v1143_v58  ;;  %v2213_v17 = vsub.f32 %v1828_v59, %v618_v34  ;;  %v2853_v58 = vld [vmem:[#allocation18_spill] sm:$0xff] }
 0x126   : > { %v2218_v55 = vsub.f32 %v1831_v60, %v618_v34  ;;  %v2226_v45 = vsub.f32 %v1847_v8, %v618_v34  ;;  %v2229_v22 = vsub.f32 %v1865_v24, %v618_v34  ;;  %v803_v8 = vld [vmem:[%s2760_s1 + $0x10] sm:$0xf] }
 0x127   : > { %v750_v11 = vadd.f32 %v749_v4, %v748_v10  ;;  %v1012_v31 = vadd.f32 %v1011_v50, %v1010_v37  ;;  %v2220_v6 = vmul.f32 0.00024414063, %v1145_v25  ;;  %v2223_v4 = vsub.f32 %v1838_v0, %v618_v34  ;;  %v2855_v10 = vld [vmem:[#allocation20_spill] sm:$0xff] }
 0x128   : > { %2847 = vst [vmem:[#allocation40_spill] sm:$0xff] %v2218_v55  ;;  %2849 = vst [vmem:[#allocation42_spill] sm:$0xff] %v2226_v45  ;;  %v2241_v25 = vsub.f32 %v1890_v54, %v618_v34  ;;  %v2270_v37 = vsub.f32 %v2855_v10, %v618_v34  ;;  %v628_v43 = vmul.f32 %v2218_v55, %v2218_v55  ;;  %v2861_v55 = vld [vmem:[#allocation23_spill] sm:$0xff] }
 0x129   : > { %v751_v20 = vmul.f32 0.00024414063, %v750_v11  ;;  %v1013_v49 = vrot.slane %v1012_v31, 1  ;;  %2848 = vst [vmem:[#allocation41_spill] sm:$0xff] %v2223_v4  ;;  %2850 = vst [vmem:[#allocation43_spill] sm:$0xff] %v2229_v22 }
 0x12a   : > { %2851 = vst [vmem:[#allocation44_spill] sm:$0xff] %v2241_v25 }
 0x12b   : > { %v2232_v59 = vsub.f32 %v1859_v21, %v751_v20  ;;  %v2235_v11 = vsub.f32 %v1862_v23, %v751_v20  ;;  %v2238_v60 = vsub.f32 %v1879_v42, %v751_v20  ;;  %v1014_v0 = vadd.f32 %v1013_v49, %v1012_v31 }
 0x12c   : > { %v2247_v24 = vsub.f32 %v1904_v14, %v751_v20  ;;  %v2250_v21 = vsub.f32 %v2852_v57, %v618_v34  ;;  %v627_v23 = vmul.f32 %v2213_v17, %v2213_v17  ;;  %v2255_v42 = vsub.f32 %v2853_v58, %v751_v20  ;;  %v817_v34 = vld [vmem:[%s2761_s2 + $0x10] sm:$0xf] }
 0x12d   : > { %v2258_v54 = vsub.f32 %v2854_v32, %v751_v20  ;;  %v760_v31 = vmul.f32 %v2232_v59, %v2232_v59  ;;  %v761_v16 = vmul.f32 %v2235_v11, %v2235_v11  ;;  %v2265_v14 = vsub.f32 %v1961_v9, %v751_v20 }
 0x12e   : > { %676 = vperm.xlu0 %1402, %v673_v40   ;;  %v762_v30 = vmul.f32 %v2238_v60, %v2238_v60  ;;  %v2275_v18 = vsub.f32 %v1973_v26, %v751_v20  ;;  %v763_v50 = vmul.f32 %v2247_v24, %v2247_v24  ;;  %v2281_v40 = vmul.f32 0.00024414063, %v1014_v0 }
 0x12f   : > { %v768_v7 = vsel %vm197_vm0, %v760_v31, 0.0  ;;  %v769_v9 = vsel %vm197_vm0, %v761_v16, 0.0  ;;  %v629_v49 = vmul.f32 %v2223_v4, %v2223_v4  ;;  %v630_v26 = vmul.f32 %v2226_v45, %v2226_v45 }
 0x130   : > { %v770_v51 = vadd.f32 %v769_v9, %v768_v7  ;;  %v764_v20 = vmul.f32 %v2255_v42, %v2255_v42  ;;  %v771_v0 = vsel %vm197_vm0, %v762_v30, 0.0  ;;  %v635_v57 = vsel %vm326_vm1, %v627_v23, 0.0  ;;  %v937_v23 = vld [vmem:[%s2760_s1 + $0x14] sm:$0xf] }
 0x131   : > { %v631_v32 = vmul.f32 %v2229_v22, %v2229_v22  ;;  %v632_v31 = vmul.f32 %v2241_v25, %v2241_v25  ;;  %v636_v16 = vsel %vm326_vm1, %v628_v43, 0.0  ;;  %v766_v10 = vmul.f32 %v2265_v14, %v2265_v14  ;;  %v2856_v25 = vld [vmem:[#allocation12_spill] sm:$0xff] }
 0x132   : > { %806 = vperm.xlu0 %1402, %v803_v8   ;;  %v765_v8 = vmul.f32 %v2258_v54, %v2258_v54  ;;  %v772_v58 = vadd.f32 %v771_v0, %v770_v51  ;;  %v767_v7 = vmul.f32 %v2275_v18, %v2275_v18  ;;  %v773_v30 = vsel %vm197_vm0, %v763_v50, 0.0 }
 0x133   : > { %v637_v9 = vadd.f32 %v636_v16, %v635_v57  ;;  %v638_v0 = vsel %vm326_vm1, %v629_v49, 0.0  ;;  %v2312_v43 = vsub.f32 %v2856_v25, %v2281_v40  ;;  %v775_v45 = vsel %vm197_vm0, %v764_v20, 0.0  ;;  %v2858_v16 = vld [vmem:[#allocation15_spill] sm:$0xff] }
 0x134   : > { %v774_v51 = vadd.f32 %v773_v30, %v772_v58  ;;  %v777_v50 = vsel %vm197_vm0, %v765_v8, 0.0  ;;  %v2322_v4 = vsub.f32 %v2858_v16, %v2281_v40  ;;  %v640_v49 = vsel %vm326_vm1, %v630_v26, 0.0  ;;  %v2860_v30 = vld [vmem:[#allocation19_spill] sm:$0xff] }
 0x135   : > { %v639_v57 = vadd.f32 %v638_v0, %v637_v9  ;;  %v2327_v25 = vsub.f32 %v2860_v30, %v2281_v40  ;;  %v1024_v8 = vmul.f32 %v2312_v43, %v2312_v43  ;;  %v1081_v26 = vld [vmem:[%s2761_s2 + $0x18] sm:$0xf]  ;;  %v779_v0 = vsel %vm197_vm0, %v766_v10, 0.0 }
 0x136   : > { %820 = vperm.xlu0 %1402, %v817_v34   ;;  %v2857_v34 = vld [vmem:[#allocation13_spill] sm:$0xff]  ;;  %2859 = vst [vmem:[#allocation16_spill] sm:$0xff] %v2322_v4  ;;  %v776_v58 = vadd.f32 %v775_v45, %v774_v51  ;;  %v1026_v45 = vmul.f32 %v2322_v4, %v2322_v4 }
 0x137   : > { %v2316_v22 = vsub.f32 %v2857_v34, %v2281_v40  ;;  %v2331_v34 = vsub.f32 %v2861_v55, %v2281_v40  ;;  %v641_v20 = vadd.f32 %v640_v49, %v639_v57  ;;  %v633_v55 = vmul.f32 %v2250_v21, %v2250_v21 }
 0x138   : > { %v778_v51 = vadd.f32 %v777_v50, %v776_v58  ;;  %v781_v57 = vsel %vm197_vm0, %v767_v7, 0.0  ;;  %v2349_v49 = vsub.f32 %v1964_v1, %v2281_v40  ;;  %v1032_v30 = vsel %vm197_vm0, %v1024_v8, 0.0  ;;  %v2863_v7 = vld [vmem:[#allocation25_spill] sm:$0xff] }
 0x139   : > { %2862 = vst [vmem:[#allocation18_spill] sm:$0xff] %v2331_v34  ;;  %v1025_v9 = vmul.f32 %v2316_v22, %v2316_v22  ;;  %v1027_v50 = vmul.f32 %v2327_v25, %v2327_v25  ;;  %v1035_v58 = vsel %vm197_vm0, %v1026_v45, 0.0  ;;  %v1028_v1 = vmul.f32 %v2331_v34, %v2331_v34  ;;  %v2867_v34 = vld [vmem:[#allocation9_spill] sm:$0xff] }
 0x13a   : > { %940 = vperm.xlu0 %1402, %v937_v23   ;;  %v642_v23 = vsel %vm326_vm1, %v631_v32, 0.0  ;;  %v780_v4 = vadd.f32 %v779_v0, %v778_v51  ;;  %v644_v32 = vsel %vm326_vm1, %v632_v31, 0.0  ;;  %v1216_v51 = vld [vmem:[%s2761_s2 + $0x1c] sm:$0xf]  ;;  %v1029_v0 = vmul.f32 %v2349_v49, %v2349_v49 }
 0x13b   : > { %v643_v16 = vadd.f32 %v642_v23, %v641_v20  ;;  %v1033_v10 = vsel %vm197_vm0, %v1025_v9, 0.0  ;;  %v2359_v20 = vsub.f32 %v2863_v7, %v2281_v40  ;;  %v634_v9 = vmul.f32 %v2270_v37, %v2270_v37 }
 0x13c   : > { %v1034_v23 = vadd.f32 %v1033_v10, %v1032_v30  ;;  %v782_v8 = vadd.f32 %v781_v57, %v780_v4  ;;  %v2376_v30 = vsub.f32 %v2867_v34, %v2220_v6  ;;  %v2869_v4 = vld [vmem:[#allocation10_spill] sm:$0xff]  ;;  %v646_v10 = vsel %vm326_vm1, %v633_v55, 0.0 }
 0x13d   : > { %2864 = vst [vmem:[#allocation22_spill] sm:$0xff] %v2359_v20  ;;  %v645_v45 = vadd.f32 %v644_v32, %v643_v16  ;;  %v2380_v57 = vsub.f32 %v2869_v4, %v2220_v6  ;;  %v2385_v16 = vsub.f32 %v1983_v53, %v2281_v40  ;;  %v1037_v32 = vsel %vm197_vm0, %v1027_v50, 0.0  ;;  %v2874_v53 = vld [vmem:[#allocation14_spill] sm:$0xff] }
 0x13e   : > { %1084 = vperm.xlu0 %1402, %v1081_v26   ;;  %v2865_v26 = vld [vmem:[#allocation8_spill] sm:$0xff]  ;;  %v1036_v7 = vadd.f32 %v1035_v58, %v1034_v23  ;;  %2868 = vst [vmem:[#allocation12_spill] sm:$0xff] %v2376_v30  ;;  %783 = vadd.xlane.f32.xlu1 %v782_v8  ;;  %v1030_v34 = vmul.f32 %v2359_v20, %v2359_v20  ;;  %v1039_v4 = vsel %vm197_vm0, %v1028_v1, 0.0  ;;  %v2875_v1 = vld [vmem:[#allocation17_spill] sm:$0xff] }
 0x13f   : > { %v2370_v31 = vsub.f32 %v2865_v26, %v2220_v6  ;;  %2870 = vst [vmem:[#allocation13_spill] sm:$0xff] %v2380_v57  ;;  %2871 = vst [vmem:[#allocation15_spill] sm:$0xff] %v2385_v16  ;;  %v2872_v26 = vld [vmem:[#allocation11_spill] sm:$0xff]  ;;  %v647_v8 = vadd.f32 %v646_v10, %v645_v45  ;;  %v2399_v40 = vsub.f32 %v2874_v53, %v2220_v6 }
 0x140   : > { %v2390_v58 = vsub.f32 %v2872_v26, %v2220_v6  ;;  %v1038_v23 = vadd.f32 %v1037_v32, %v1036_v7  ;;  %v1156_v50 = vmul.f32 %v2376_v30, %v2376_v30  ;;  %v648_v26 = vsel %vm326_vm1, %v634_v9, 0.0 }
 0x141   : > { %2866 = vst [vmem:[#allocation20_spill] sm:$0xff] %v2370_v31  ;;  %v1155_v55 = vmul.f32 %v2370_v31, %v2370_v31  ;;  %v1041_v7 = vsel %vm197_vm0, %v1029_v0, 0.0  ;;  %v2410_v45 = vsub.f32 %v2875_v1, %v2220_v6  ;;  %v1159_v1 = vmul.f32 %v2399_v40, %v2399_v40 }
 0x142   : > { %2873 = vst [vmem:[#allocation19_spill] sm:$0xff] %v2390_v58  ;;  %1219 = vperm.xlu0 %1402, %v1216_v51   ;;  %v1157_v51 = vmul.f32 %v2380_v57, %v2380_v57  ;;  %v1040_v20 = vadd.f32 %v1039_v4, %v1038_v23  ;;  %386 = vadd.xlane.f32.xlu1 %v2215_v5  ;;  %v1164_v53 = vsel %vm326_vm1, %v1156_v50, 0.0  ;;  %v1043_v23 = vsel %vm197_vm0, %v1030_v34, 0.0  ;;  %v2876_v5 = vld [vmem:[#allocation21_spill] sm:$0xff]  ;;  %v2877_v50 = vld [vmem:[#allocation24_spill] sm:$0xff] }
 0x143   : > { %v1158_v10 = vmul.f32 %v2390_v58, %v2390_v58  ;;  %v1163_v32 = vsel %vm326_vm1, %v1155_v55, 0.0  ;;  %v1031_v57 = vmul.f32 %v2385_v16, %v2385_v16  ;;  %v649_v4 = vadd.f32 %v648_v26, %v647_v8 }
 0x144   : > { %v1042_v9 = vadd.f32 %v1041_v7, %v1040_v20  ;;  %v1165_v0 = vadd.f32 %v1164_v53, %v1163_v32  ;;  %v2421_v30 = vsub.f32 %v2876_v5, %v2220_v6  ;;  %v1166_v58 = vsel %vm326_vm1, %v1157_v51, 0.0  ;;  %v1067_v5 = vld [vmem:[%s2760_s1 + $0x18] sm:$0xf] }
 0x145   : > { %v2428_v16 = vsub.f32 %v2877_v50, %v2220_v6  ;;  %v1160_v20 = vmul.f32 %v2410_v45, %v2410_v45  ;;  %v1168_v34 = vsel %vm326_vm1, %v1158_v10, 0.0  ;;  %v1045_v8 = vsel %vm197_vm0, %v1031_v57, 0.0 }
 0x146   : > { %v1044_v55 = vadd.f32 %v1043_v23, %v1042_v9  ;;  %v1167_v31 = vadd.f32 %v1166_v58, %v1165_v0  ;;  %650 = vadd.xlane.f32.xlu1 %v649_v4  ;;  %v1161_v32 = vmul.f32 %v2421_v30, %v2421_v30  ;;  %v1170_v51 = vsel %vm326_vm1, %v1159_v1, 0.0  ;;  %v688_v0 = vld [vmem:[%s2761_s2 + $0xc] sm:$0xf]  ;;  %v952_v4 = vld [vmem:[%s2761_s2 + $0x14] sm:$0xf] }
 0x147   : > { %v1162_v6 = vmul.f32 %v2428_v16, %v2428_v16  ;;  %v1172_v53 = vsel %vm326_vm1, %v1160_v20, 0.0  ;;  %v1201_v1 = vld [vmem:[%s2760_s1 + $0x1c] sm:$0xf] }
 0x148   : > { %v1169_v26 = vadd.f32 %v1168_v34, %v1167_v31  ;;  %v1046_v7 = vadd.f32 %v1045_v8, %v1044_v55  ;;  %v1174_v23 = vsel %vm326_vm1, %v1161_v32, 0.0 }
 0x149   : > { %v1176_v57 = vsel %vm326_vm1, %v1162_v6, 0.0 }
 0x14a   : > { %v1171_v58 = vadd.f32 %v1170_v51, %v1169_v26  ;;  %1047 = vadd.xlane.f32.xlu1 %v1046_v7 }
 0x14c   : > { %v1173_v9 = vadd.f32 %v1172_v53, %v1171_v58 }
 0x14e   : > { %v1175_v10 = vadd.f32 %v1174_v23, %v1173_v9 }
 0x150   : > { %v1177_v31 = vadd.f32 %v1176_v57, %v1175_v10 }
 0x152   : > { %1178 = vadd.xlane.f32.xlu1 %v1177_v31 }
 0x163   : > { %691 = vperm.xlu1 %1401, %v688_v0  }
 0x167   : > { %955 = vperm.xlu1 %1401, %v952_v4  }
 0x16b   : > { %1070 = vperm.xlu1 %1401, %v1067_v5  }
 0x16f   : > { %1204 = vperm.xlu1 %1401, %v1201_v1  }
 0x17f   : > { %v255_v55 = vpop.xlane.xlu0 %254 }
 0x180   : > { %v256_v50 = vsel %vm197_vm0, %v255_v55, 0.0 }
 0x181   : > { %v257_v20 = vrot.slane %v256_v50, 4 }
 0x183   : > { %v258_v34 = vadd.f32 %v257_v20, %v256_v50 }
 0x185   : > { %v259_v8 = vrot.slane %v258_v34, 2 }
 0x186   : > { %v520_v26 = vpop.xlane.xlu1 %519 }
 0x187   : > { %v260_v7 = vadd.f32 %v259_v8, %v258_v34  ;;  %v521_v32 = vsel %vm197_vm0, %v520_v26, 0.0 }
 0x188   : > { %v522_v51 = vrot.slane %v521_v32, 4 }
 0x189   : > { %v261_v58 = vrot.slane %v260_v7, 1 }
 0x18a   : > { %v523_v6 = vadd.f32 %v522_v51, %v521_v32 }
 0x18b   : > { %v262_v53 = vadd.f32 %v261_v58, %v260_v7  ;;  %v2878_v58 = vld [vmem:[#allocation32_spill] sm:$0xff] }
 0x18c   : > { %v524_v9 = vrot.slane %v523_v6, 2 }
 0x18d   : > { %v263_v23 = vmul.f32 0.00024414063, %v262_v53  ;;  %v2879_v53 = vld [vmem:[#allocation26_spill] sm:$0xff] }
 0x18e   : > { %v525_v10 = vadd.f32 %v524_v9, %v523_v6 }
 0x18f   : > { %v264_v57 = vadd.f32 1e-05, %v263_v23 }
 0x190   : > { %v526_v31 = vrot.slane %v525_v10, 1 }
 0x191   : > { %1403 = vrsqrt.f32 %v264_v57 }
 0x192   : > { %v527_v0 = vadd.f32 %v526_v31, %v525_v10  ;;  %v2880_v10 = vld [vmem:[#allocation27_spill] sm:$0xff] }
 0x194   : > { %v528_v4 = vmul.f32 0.00024414063, %v527_v0 }
 0x196   : > { %v529_v5 = vadd.f32 1e-05, %v528_v4 }
 0x198   : > { %1405 = vrsqrt.f32 %v529_v5 }
 0x19e   : > { %v1404_v55 = vpop.eup %1403 }
 0x19f   : > { %v266_v20 = vmul.f32 %v1404_v55, %v1995_v56  ;;  %v267_v34 = vmul.f32 %v1404_v55, %v1998_v61  ;;  %v268_v8 = vmul.f32 %v1404_v55, %v2001_v52  ;;  %v269_v26 = vmul.f32 %v1404_v55, %v2004_v62 }
 0x1a0   : > { %v270_v7 = vmul.f32 %v1404_v55, %v2007_v38  ;;  %v271_v32 = vmul.f32 %v1404_v55, %v2019_v46  ;;  %v272_v51 = vmul.f32 %v1404_v55, %v2025_v48  ;;  %v273_v6 = vmul.f32 %v1404_v55, %v2878_v58 }
 0x1a1   : > { %v2456_v1 = vpop.xlane.xlu0 %914  ;;  %v280_v9 = vmul.f32 %v2879_v53, %v266_v20  ;;  %v281_v23 = vmul.f32 %v2879_v53, %v267_v34  ;;  %v282_v56 = vmul.f32 %v2879_v53, %v268_v8  ;;  %v283_v61 = vmul.f32 %v2879_v53, %v269_v26 }
 0x1a2   : > { %v917_v50 = vrot.slane %v2456_v1, 4  ;;  %v284_v52 = vmul.f32 %v2879_v53, %v270_v7  ;;  %v285_v62 = vmul.f32 %v2879_v53, %v271_v32  ;;  %v286_v38 = vmul.f32 %v2879_v53, %v272_v51 }
 0x1a3   : > { %v287_v46 = vmul.f32 %v2879_v53, %v273_v6  ;;  %v294_v48 = vadd.f32 %v2880_v10, %v280_v9  ;;  %v295_v57 = vadd.f32 %v2880_v10, %v281_v23  ;;  %v296_v31 = vadd.f32 %v2880_v10, %v282_v56  ;;  %v2881_v9 = vld [vmem:[#allocation29_spill] sm:$0xff]  ;;  %v2882_v56 = vld [vmem:[#allocation30_spill] sm:$0xff] }
 0x1a4   : > { %v297_v0 = vadd.f32 %v2880_v10, %v283_v61  ;;  %v298_v4 = vadd.f32 %v2880_v10, %v284_v52  ;;  %v299_v5 = vadd.f32 %v2880_v10, %v285_v62  ;;  %v300_v55 = vadd.f32 %v2880_v10, %v286_v38  ;;  %v2883_v52 = vld [vmem:[#allocation31_spill] sm:$0xff]  ;;  %v2884_v38 = vld [vmem:[#allocation33_spill] sm:$0xff] }
 0x1a5   : > { %v301_v20 = vadd.f32 %v2880_v10, %v287_v46  ;;  %v1406_v34 = vpop.eup %1405  ;;  %v302_v8 = vmax.f32 %v294_v48, 0.0  ;;  %v303_v26 = vmax.f32 %v295_v57, 0.0  ;;  %v304_v7 = vmax.f32 %v296_v31, 0.0 }
 0x1a6   : > { %v305_v32 = vmax.f32 %v297_v0, 0.0  ;;  %v306_v51 = vmax.f32 %v298_v4, 0.0  ;;  %v307_v58 = vmax.f32 %v299_v5, 0.0  ;;  %v308_v6 = vmax.f32 %v300_v55, 0.0 }
 0x1a7   : > { %v309_v53 = vmax.f32 %v301_v20, 0.0  ;;  %310 = vst [vmem:[%s2485_s4] sm:$0xf] %v302_v8  ;;  %311 = vst [vmem:[%s2485_s4 + $0x8] sm:$0xf] %v303_v26  ;;  %v531_v23 = vmul.f32 %v1406_v34, %v2881_v9  ;;  %v532_v61 = vmul.f32 %v1406_v34, %v2882_v56  ;;  %v533_v62 = vmul.f32 %v1406_v34, %v2883_v52  ;;  %v2885_v26 = vld [vmem:[#allocation34_spill] sm:$0xff] }
 0x1a8   : > { %312 = vst [vmem:[%s2485_s4 + $0x10] sm:$0xf] %v304_v7  ;;  %313 = vst [vmem:[%s2485_s4 + $0x18] sm:$0xf] %v305_v32  ;;  %v534_v46 = vmul.f32 %v1406_v34, %v2884_v38  ;;  %v535_v10 = vmul.f32 %v1406_v34, %v2055_v35  ;;  %v536_v48 = vmul.f32 %v1406_v34, %v2064_v2  ;;  %v919_v38 = vsel %vm197_vm0, %v917_v50, 0.0 }
 0x1a9   : > { %314 = vst [vmem:[%s2485_s4 + $0x20] sm:$0xf] %v306_v51  ;;  %315 = vst [vmem:[%s2485_s4 + $0x28] sm:$0xf] %v307_v58  ;;  %v537_v57 = vmul.f32 %v1406_v34, %v2073_v19  ;;  %v538_v31 = vmul.f32 %v1406_v34, %v2080_v33  ;;  %v545_v0 = vmul.f32 %v2164_v15, %v531_v23 }
 0x1aa   : > { %316 = vst [vmem:[%s2485_s4 + $0x30] sm:$0xf] %v308_v6  ;;  %317 = vst [vmem:[%s2485_s4 + $0x38] sm:$0xf] %v309_v53  ;;  %v546_v4 = vmul.f32 %v2164_v15, %v532_v61  ;;  %v547_v5 = vmul.f32 %v2164_v15, %v533_v62  ;;  %v548_v55 = vmul.f32 %v2164_v15, %v534_v46  ;;  %v920_v46 = vrot.slane %v919_v38, 4 }
 0x1ab   : > { %v549_v20 = vmul.f32 %v2164_v15, %v535_v10  ;;  %v550_v8 = vmul.f32 %v2164_v15, %v536_v48  ;;  %v551_v35 = vmul.f32 %v2164_v15, %v537_v57  ;;  %v552_v2 = vmul.f32 %v2164_v15, %v538_v31 }
 0x1ac   : > { %v559_v19 = vadd.f32 %v2885_v26, %v545_v0  ;;  %v560_v33 = vadd.f32 %v2885_v26, %v546_v4  ;;  %v561_v34 = vadd.f32 %v2885_v26, %v547_v5  ;;  %v562_v7 = vadd.f32 %v2885_v26, %v548_v55  ;;  %v2530_v5 = vpop.permute.xlu0 %676 }
 0x1ad   : > { %v563_v32 = vadd.f32 %v2885_v26, %v549_v20  ;;  %v564_v51 = vadd.f32 %v2885_v26, %v550_v8  ;;  %v565_v58 = vadd.f32 %v2885_v26, %v551_v35  ;;  %v566_v15 = vadd.f32 %v2885_v26, %v552_v2 }
 0x1ae   : > { %v567_v6 = vmax.f32 %v559_v19, 0.0  ;;  %v568_v53 = vmax.f32 %v560_v33, 0.0  ;;  %v569_v9 = vmax.f32 %v561_v34, 0.0  ;;  %v570_v23 = vmax.f32 %v562_v7, 0.0 }
 0x1af   : > { %v571_v56 = vmax.f32 %v563_v32, 0.0  ;;  %v572_v61 = vmax.f32 %v564_v51, 0.0  ;;  %v573_v52 = vmax.f32 %v565_v58, 0.0  ;;  %v574_v62 = vmax.f32 %v566_v15, 0.0 }
 0x1b0   : > { %575 = vst [vmem:[%s2485_s4 + $0x40] sm:$0xf] %v567_v6  ;;  %576 = vst [vmem:[%s2485_s4 + $0x48] sm:$0xf] %v568_v53  ;;  %v921_v10 = vadd.f32 %v920_v46, %v919_v38  ;;  %v2533_v26 = vpop.permute.xlu0 %806 }
 0x1b1   : > { %577 = vst [vmem:[%s2485_s4 + $0x50] sm:$0xf] %v569_v9  ;;  %578 = vst [vmem:[%s2485_s4 + $0x58] sm:$0xf] %v570_v23 }
 0x1b2   : > { %579 = vst [vmem:[%s2485_s4 + $0x60] sm:$0xf] %v571_v56  ;;  %580 = vst [vmem:[%s2485_s4 + $0x68] sm:$0xf] %v572_v61  ;;  %v922_v48 = vrot.slane %v921_v10, 2 }
 0x1b3   : > { %581 = vst [vmem:[%s2485_s4 + $0x70] sm:$0xf] %v573_v52  ;;  %582 = vst [vmem:[%s2485_s4 + $0x78] sm:$0xf] %v574_v62 }
 0x1b4   : > { %v923_v57 = vadd.f32 %v922_v48, %v921_v10  ;;  %v2536_v7 = vpop.permute.xlu0 %820 }
 0x1b6   : > { %v924_v31 = vrot.slane %v923_v57, 1 }
 0x1b8   : > { %v925_v0 = vadd.f32 %v924_v31, %v923_v57  ;;  %v941_v48 = vpop.permute.xlu0 %940 }
 0x1ba   : > { %v926_v4 = vmul.f32 0.00024414063, %v925_v0 }
 0x1bc   : > { %v927_v20 = vadd.f32 1e-05, %v926_v4  ;;  %v2541_v4 = vrot.slane %v2145_v13, 4 }
 0x1be   : > { %1407 = vrsqrt.f32 %v927_v20 }
 0x1c7   : > { %v784_v55 = vpop.xlane.xlu1 %783 }
 0x1c8   : > { %v785_v8 = vsel %vm197_vm0, %v784_v55, 0.0  ;;  %v2886_v55 = vld [vmem:[#allocation28_spill] sm:$0xff] }
 0x1c9   : > { %v786_v1 = vrot.slane %v785_v8, 4  ;;  %v2544_v20 = vrot.slane %v2886_v55, 4 }
 0x1cb   : > { %v787_v35 = vadd.f32 %v786_v1, %v785_v8  ;;  %v387_v50 = vpop.xlane.xlu1 %386  ;;  %v1408_v10 = vpop.eup %1407 }
 0x1cc   : > { %v389_v2 = vrot.slane %v387_v50, 4 }
 0x1cd   : > { %v788_v19 = vrot.slane %v787_v35, 2 }
 0x1ce   : > { %v391_v34 = vsel %vm197_vm0, %v389_v2, 0.0 }
 0x1cf   : > { %v651_v33 = vpop.xlane.xlu1 %650  ;;  %v789_v32 = vadd.f32 %v788_v19, %v787_v35  ;;  %v392_v51 = vrot.slane %v391_v34, 4 }
 0x1d0   : > { %v653_v58 = vrot.slane %v651_v33, 4  ;;  %v929_v33 = vmul.f32 %v1408_v10, %v2098_v47  ;;  %v934_v47 = vmul.f32 %v1408_v10, %v2113_v29 }
 0x1d1   : > { %v790_v53 = vrot.slane %v789_v32, 1  ;;  %v393_v9 = vadd.f32 %v392_v51, %v391_v34  ;;  %v930_v34 = vmul.f32 %v1408_v10, %v2101_v63 }
 0x1d2   : > { %v655_v23 = vsel %vm197_vm0, %v653_v58, 0.0 }
 0x1d3   : > { %v1048_v15 = vpop.xlane.xlu1 %1047  ;;  %v656_v61 = vrot.slane %v655_v23, 4  ;;  %v791_v52 = vadd.f32 %v790_v53, %v789_v32  ;;  %v394_v62 = vrot.slane %v393_v9, 2  ;;  %v942_v32 = vrot.slane %v941_v48, 4 }
 0x1d4   : > { %v1049_v6 = vsel %vm197_vm0, %v1048_v15, 0.0  ;;  %v932_v53 = vmul.f32 %v1408_v10, %v2107_v3 }
 0x1d5   : > { %v1050_v56 = vrot.slane %v1049_v6, 4  ;;  %v657_v46 = vadd.f32 %v656_v61, %v655_v23  ;;  %v792_v57 = vmul.f32 0.00024414063, %v791_v52  ;;  %v395_v31 = vadd.f32 %v394_v62, %v393_v9 }
 0x1d6   : > { %v933_v61 = vmul.f32 %v1408_v10, %v2110_v12  ;;  %v935_v62 = vmul.f32 %v1408_v10, %v2124_v28  ;;  %v947_v55 = vmul.f32 %v942_v32, %v932_v53 }
 0x1d7   : > { %v1051_v38 = vadd.f32 %v1050_v56, %v1049_v6  ;;  %v658_v8 = vrot.slane %v657_v46, 2  ;;  %v793_v35 = vadd.f32 1e-05, %v792_v57  ;;  %v396_v50 = vrot.slane %v395_v31, 1 }
 0x1d8   : > { %v931_v6 = vmul.f32 %v1408_v10, %v2104_v39  ;;  %v944_v57 = vmul.f32 %v942_v32, %v929_v33  ;;  %v948_v12 = vmul.f32 %v942_v32, %v933_v61 }
 0x1d9   : > { %v1052_v0 = vrot.slane %v1051_v38, 2  ;;  %v659_v51 = vadd.f32 %v658_v8, %v657_v46  ;;  %1409 = vrsqrt.f32 %v793_v35  ;;  %v397_v58 = vadd.f32 %v396_v50, %v395_v31 }
 0x1da   : > { %v945_v31 = vmul.f32 %v942_v32, %v930_v34  ;;  %v946_v3 = vmul.f32 %v942_v32, %v931_v6 }
 0x1db   : > { %v1179_v1 = vpop.xlane.xlu1 %1178  ;;  %v1053_v2 = vadd.f32 %v1052_v0, %v1051_v38  ;;  %v660_v9 = vrot.slane %v659_v51, 1  ;;  %v398_v52 = vmul.f32 0.00024414063, %v397_v58  ;;  %v936_v38 = vmul.f32 %v1408_v10, %v2140_v44 }
 0x1dc   : > { %v1181_v19 = vrot.slane %v1179_v1, 4 }
 0x1dd   : > { %v1054_v15 = vrot.slane %v1053_v2, 1  ;;  %v661_v46 = vadd.f32 %v660_v9, %v659_v51  ;;  %v399_v39 = vadd.f32 1e-05, %v398_v52  ;;  %v951_v28 = vmul.f32 %v942_v32, %v936_v38 }
 0x1de   : > { %v1183_v13 = vsel %vm197_vm0, %v1181_v19, 0.0  ;;  %v950_v19 = vmul.f32 %v942_v32, %v935_v62 }
 0x1df   : > { %v1184_v23 = vrot.slane %v1183_v13, 4  ;;  %v692_v56 = vpop.permute.xlu1 %691  ;;  %v1055_v63 = vadd.f32 %v1054_v15, %v1053_v2  ;;  %v662_v8 = vmul.f32 0.00024414063, %v661_v46  ;;  %1411 = vrsqrt.f32 %v399_v39 }
 0x1e0   : > { %v949_v2 = vmul.f32 %v942_v32, %v934_v47  ;;  %v2561_v39 = vrot.slane %v692_v56, 4 }
 0x1e1   : > { %v1185_v48 = vadd.f32 %v1184_v23, %v1183_v13  ;;  %v1056_v0 = vmul.f32 0.00024414063, %v1055_v63  ;;  %v663_v44 = vadd.f32 1e-05, %v662_v8 }
 0x1e3   : > { %v1186_v1 = vrot.slane %v1185_v48, 2  ;;  %v956_v35 = vpop.permute.xlu1 %955  ;;  %v1057_v29 = vadd.f32 1e-05, %v1056_v0 }
 0x1e4   : > { %v957_v50 = vrot.slane %v956_v35, 4 }
 0x1e5   : > { %v1187_v58 = vadd.f32 %v1186_v1, %v1185_v48  ;;  %1413 = vrsqrt.f32 %v1057_v29 }
 0x1e6   : > { %v959_v10 = vadd.f32 %v957_v50, %v944_v57  ;;  %v960_v51 = vadd.f32 %v957_v50, %v945_v31  ;;  %v961_v33 = vadd.f32 %v957_v50, %v946_v3  ;;  %v962_v15 = vadd.f32 %v957_v50, %v947_v55  ;;  %v1410_v48 = vpop.eup %1409 }
 0x1e7   : > { %v1188_v34 = vrot.slane %v1187_v58, 1  ;;  %v963_v13 = vadd.f32 %v957_v50, %v948_v12  ;;  %v964_v6 = vadd.f32 %v957_v50, %v949_v2  ;;  %v965_v53 = vadd.f32 %v957_v50, %v950_v19 }
 0x1e8   : > { %v966_v9 = vadd.f32 %v957_v50, %v951_v28  ;;  %v967_v23 = vmax.f32 %v959_v10, 0.0  ;;  %v968_v47 = vmax.f32 %v960_v51, 0.0  ;;  %v969_v32 = vmax.f32 %v961_v33, 0.0 }
 0x1e9   : > { %v1189_v61 = vadd.f32 %v1188_v34, %v1187_v58  ;;  %v970_v52 = vmax.f32 %v962_v15, 0.0  ;;  %v971_v63 = vmax.f32 %v963_v13, 0.0  ;;  %v972_v62 = vmax.f32 %v964_v6, 0.0 }
 0x1ea   : > { %v973_v38 = vmax.f32 %v965_v53, 0.0  ;;  %v974_v46 = vmax.f32 %v966_v9, 0.0  ;;  %975 = vst [vmem:[%s2485_s4 + $0x80] sm:$0xf0] %v967_v23  ;;  %v2557_v57 = vrot.slane %v2530_v5, 4  ;;  %1415 = vrsqrt.f32 %v663_v44 }
 0x1eb   : > { %v2559_v31 = vmul.f32 0.00024414063, %v1189_v61  ;;  %976 = vst [vmem:[%s2485_s4 + $0x88] sm:$0xf0] %v968_v47  ;;  %977 = vst [vmem:[%s2485_s4 + $0x90] sm:$0xf0] %v969_v32  ;;  %v795_v0 = vmul.f32 %v1410_v48, %v2232_v59  ;;  %v796_v3 = vmul.f32 %v1410_v48, %v2235_v11  ;;  %v797_v55 = vmul.f32 %v1410_v48, %v2238_v60  ;;  %v2887_v61 = vld [vmem:[#allocation35_spill] sm:$0xff] }
 0x1ec   : > { %978 = vst [vmem:[%s2485_s4 + $0x98] sm:$0xf0] %v970_v52  ;;  %v798_v8 = vmul.f32 %v1410_v48, %v2247_v24  ;;  %979 = vst [vmem:[%s2485_s4 + $0xa0] sm:$0xf0] %v971_v63  ;;  %v799_v5 = vmul.f32 %v1410_v48, %v2255_v42  ;;  %v800_v56 = vmul.f32 %v1410_v48, %v2258_v54  ;;  %v1412_v19 = vpop.eup %1411  ;;  %v2888_v32 = vld [vmem:[#allocation36_spill] sm:$0xff]  ;;  %v2889_v63 = vld [vmem:[#allocation37_spill] sm:$0xff] }
 0x1ed   : > { %980 = vst [vmem:[%s2485_s4 + $0xa8] sm:$0xf0] %v972_v62  ;;  %981 = vst [vmem:[%s2485_s4 + $0xb0] sm:$0xf0] %v973_v38  ;;  %v801_v1 = vmul.f32 %v1410_v48, %v2265_v14  ;;  %v802_v35 = vmul.f32 %v1410_v48, %v2275_v18  ;;  %v809_v59 = vmul.f32 %v2533_v26, %v795_v0  ;;  %v2890_v38 = vld [vmem:[#allocation38_spill] sm:$0xff]  ;;  %v2891_v48 = vld [vmem:[#allocation39_spill] sm:$0xff] }
 0x1ee   : > { %982 = vst [vmem:[%s2485_s4 + $0xb8] sm:$0xf0] %v974_v46  ;;  %v810_v11 = vmul.f32 %v2533_v26, %v796_v3  ;;  %v811_v60 = vmul.f32 %v2533_v26, %v797_v55  ;;  %v812_v24 = vmul.f32 %v2533_v26, %v798_v8  ;;  %v813_v12 = vmul.f32 %v2533_v26, %v799_v5 }
 0x1ef   : > { %v814_v29 = vmul.f32 %v2533_v26, %v800_v56  ;;  %v815_v42 = vmul.f32 %v2533_v26, %v801_v1  ;;  %v816_v54 = vmul.f32 %v2533_v26, %v802_v35  ;;  %v823_v14 = vadd.f32 %v2536_v7, %v809_v59 }
 0x1f0   : > { %v824_v18 = vadd.f32 %v2536_v7, %v810_v11  ;;  %v825_v50 = vadd.f32 %v2536_v7, %v811_v60  ;;  %v826_v2 = vadd.f32 %v2536_v7, %v812_v24  ;;  %v827_v28 = vadd.f32 %v2536_v7, %v813_v12 }
 0x1f1   : > { %v828_v58 = vadd.f32 %v2536_v7, %v814_v29  ;;  %v829_v44 = vadd.f32 %v2536_v7, %v815_v42  ;;  %v830_v26 = vadd.f32 %v2536_v7, %v816_v54  ;;  %v831_v10 = vmax.f32 %v823_v14, 0.0 }
 0x1f2   : > { %v832_v51 = vmax.f32 %v824_v18, 0.0  ;;  %v833_v33 = vmax.f32 %v825_v50, 0.0  ;;  %v834_v34 = vmax.f32 %v826_v2, 0.0  ;;  %v835_v15 = vmax.f32 %v827_v28, 0.0  ;;  %v2594_v9 = vpop.eup %1413 }
 0x1f3   : > { %v836_v13 = vmax.f32 %v828_v58, 0.0  ;;  %v837_v6 = vmax.f32 %v829_v44, 0.0  ;;  %v838_v53 = vmax.f32 %v830_v26, 0.0  ;;  %839 = vst [vmem:[%s2485_s4 + $0x80] sm:$0xf] %v831_v10  ;;  %v401_v7 = vmul.f32 %v1412_v19, %v2128_v36  ;;  %v2892_v26 = vld [vmem:[#allocation40_spill] sm:$0xff] }
 0x1f4   : > { %840 = vst [vmem:[%s2485_s4 + $0x88] sm:$0xf] %v832_v51  ;;  %841 = vst [vmem:[%s2485_s4 + $0x90] sm:$0xf] %v833_v33  ;;  %v402_v23 = vmul.f32 %v1412_v19, %v2132_v41  ;;  %v403_v47 = vmul.f32 %v1412_v19, %v2887_v61  ;;  %v404_v52 = vmul.f32 %v1412_v19, %v2888_v32  ;;  %v1191_v44 = vadd.f32 1e-05, %v2559_v31 }
 0x1f5   : > { %842 = vst [vmem:[%s2485_s4 + $0x98] sm:$0xf] %v834_v34  ;;  %843 = vst [vmem:[%s2485_s4 + $0xa0] sm:$0xf] %v835_v15  ;;  %v405_v62 = vmul.f32 %v1412_v19, %v2889_v63  ;;  %v406_v46 = vmul.f32 %v1412_v19, %v2890_v38  ;;  %v407_v0 = vmul.f32 %v1412_v19, %v2891_v48  ;;  %v2893_v51 = vld [vmem:[#allocation41_spill] sm:$0xff]  ;;  %v2894_v34 = vld [vmem:[#allocation42_spill] sm:$0xff] }
 0x1f6   : > { %844 = vst [vmem:[%s2485_s4 + $0xa8] sm:$0xf] %v836_v13  ;;  %845 = vst [vmem:[%s2485_s4 + $0xb0] sm:$0xf] %v837_v6  ;;  %v408_v3 = vmul.f32 %v1412_v19, %v2201_v27  ;;  %v416_v36 = vmul.f32 %v2541_v4, %v401_v7  ;;  %v417_v41 = vmul.f32 %v2541_v4, %v402_v23  ;;  %v2895_v13 = vld [vmem:[#allocation43_spill] sm:$0xff]  ;;  %1417 = vrsqrt.f32 %v1191_v44 }
 0x1f7   : > { %846 = vst [vmem:[%s2485_s4 + $0xb8] sm:$0xf] %v838_v53  ;;  %v418_v55 = vmul.f32 %v2541_v4, %v403_v47  ;;  %v419_v8 = vmul.f32 %v2541_v4, %v404_v52  ;;  %v420_v5 = vmul.f32 %v2541_v4, %v405_v62  ;;  %v421_v56 = vmul.f32 %v2541_v4, %v406_v46  ;;  %v1416_v59 = vpop.eup %1415  ;;  %v2896_v53 = vld [vmem:[#allocation44_spill] sm:$0xff] }
 0x1f8   : > { %v422_v1 = vmul.f32 %v2541_v4, %v407_v0  ;;  %v423_v35 = vmul.f32 %v2541_v4, %v408_v3  ;;  %v431_v11 = vadd.f32 %v2544_v20, %v416_v36  ;;  %v432_v27 = vadd.f32 %v2544_v20, %v417_v41 }
 0x1f9   : > { %v433_v60 = vadd.f32 %v2544_v20, %v418_v55  ;;  %v434_v24 = vadd.f32 %v2544_v20, %v419_v8  ;;  %v435_v12 = vadd.f32 %v2544_v20, %v420_v5  ;;  %v436_v29 = vadd.f32 %v2544_v20, %v421_v56 }
 0x1fa   : > { %v437_v42 = vadd.f32 %v2544_v20, %v422_v1  ;;  %v438_v4 = vadd.f32 %v2544_v20, %v423_v35  ;;  %v439_v54 = vmax.f32 %v431_v11, 0.0  ;;  %v440_v14 = vmax.f32 %v432_v27, 0.0 }
 0x1fb   : > { %v441_v18 = vmax.f32 %v433_v60, 0.0  ;;  %v442_v50 = vmax.f32 %v434_v24, 0.0  ;;  %v443_v2 = vmax.f32 %v435_v12, 0.0  ;;  %v444_v19 = vmax.f32 %v436_v29, 0.0  ;;  %v2898_v12 = vld [vmem:[#allocation18_spill] sm:$0xff] }
 0x1fc   : > { %v445_v28 = vmax.f32 %v437_v42, 0.0  ;;  %v446_v58 = vmax.f32 %v438_v4, 0.0  ;;  %447 = vst [vmem:[%s2485_s4] sm:$0xf0] %v439_v54  ;;  %448 = vst [vmem:[%s2485_s4 + $0x8] sm:$0xf0] %v440_v14  ;;  %v665_v20 = vmul.f32 %v1416_v59, %v2213_v17  ;;  %v666_v10 = vmul.f32 %v1416_v59, %v2892_v26  ;;  %v1085_v4 = vpop.permute.xlu0 %1084  ;;  %v2900_v14 = vld [vmem:[#allocation15_spill] sm:$0xff] }
 0x1fd   : > { %449 = vst [vmem:[%s2485_s4 + $0x10] sm:$0xf0] %v441_v18  ;;  %450 = vst [vmem:[%s2485_s4 + $0x18] sm:$0xf0] %v442_v50  ;;  %v667_v33 = vmul.f32 %v1416_v59, %v2893_v51  ;;  %v668_v15 = vmul.f32 %v1416_v59, %v2894_v34  ;;  %v669_v6 = vmul.f32 %v1416_v59, %v2895_v13 }
 0x1fe   : > { %451 = vst [vmem:[%s2485_s4 + $0x20] sm:$0xf0] %v443_v2  ;;  %452 = vst [vmem:[%s2485_s4 + $0x28] sm:$0xf0] %v444_v19  ;;  %v670_v7 = vmul.f32 %v1416_v59, %v2896_v53  ;;  %v671_v23 = vmul.f32 %v1416_v59, %v2250_v21  ;;  %v672_v31 = vmul.f32 %v1416_v59, %v2270_v37 }
 0x1ff   : > { %453 = vst [vmem:[%s2485_s4 + $0x30] sm:$0xf0] %v445_v28  ;;  %454 = vst [vmem:[%s2485_s4 + $0x38] sm:$0xf0] %v446_v58  ;;  %v680_v17 = vmul.f32 %v2557_v57, %v665_v20  ;;  %v681_v61 = vmul.f32 %v2557_v57, %v666_v10  ;;  %v682_v47 = vmul.f32 %v2557_v57, %v667_v33 }
 0x200   : > { %v683_v32 = vmul.f32 %v2557_v57, %v668_v15  ;;  %v684_v52 = vmul.f32 %v2557_v57, %v669_v6  ;;  %v685_v63 = vmul.f32 %v2557_v57, %v670_v7  ;;  %v686_v62 = vmul.f32 %v2557_v57, %v671_v23 }
 0x201   : > { %v687_v38 = vmul.f32 %v2557_v57, %v672_v31  ;;  %v695_v21 = vadd.f32 %v2561_v39, %v680_v17  ;;  %v696_v37 = vadd.f32 %v2561_v39, %v681_v61  ;;  %v697_v46 = vadd.f32 %v2561_v39, %v682_v47  ;;  %v1220_v47 = vpop.permute.xlu0 %1219 }
 0x202   : > { %v698_v48 = vadd.f32 %v2561_v39, %v683_v32  ;;  %v699_v0 = vadd.f32 %v2561_v39, %v684_v52  ;;  %v700_v3 = vadd.f32 %v2561_v39, %v685_v63  ;;  %v701_v36 = vadd.f32 %v2561_v39, %v686_v62  ;;  %v2901_v63 = vld [vmem:[#allocation20_spill] sm:$0xff] }
 0x203   : > { %v702_v57 = vadd.f32 %v2561_v39, %v687_v38  ;;  %v703_v41 = vmax.f32 %v695_v21, 0.0  ;;  %v704_v55 = vmax.f32 %v696_v37, 0.0  ;;  %v705_v8 = vmax.f32 %v697_v46, 0.0  ;;  %v2897_v39 = vld [vmem:[#allocation16_spill] sm:$0xff]  ;;  %v1418_v53 = vpop.eup %1417  ;;  %v2903_v37 = vld [vmem:[#allocation13_spill] sm:$0xff] }
 0x204   : > { %v706_v5 = vmax.f32 %v698_v48, 0.0  ;;  %v707_v56 = vmax.f32 %v699_v0, 0.0  ;;  %v708_v1 = vmax.f32 %v700_v3, 0.0  ;;  %v709_v35 = vmax.f32 %v701_v36, 0.0  ;;  %v2902_v38 = vld [vmem:[#allocation12_spill] sm:$0xff]  ;;  %v2904_v48 = vld [vmem:[#allocation19_spill] sm:$0xff] }
 0x205   : > { %v710_v59 = vmax.f32 %v702_v57, 0.0  ;;  %711 = vst [vmem:[%s2485_s4 + $0x40] sm:$0xf0] %v703_v41  ;;  %712 = vst [vmem:[%s2485_s4 + $0x48] sm:$0xf0] %v704_v55  ;;  %v1059_v11 = vmul.f32 %v2594_v9, %v2312_v43  ;;  %v1060_v27 = vmul.f32 %v2594_v9, %v2316_v22  ;;  %v1061_v60 = vmul.f32 %v2594_v9, %v2897_v39  ;;  %v1071_v43 = vpop.permute.xlu1 %1070  ;;  %v2899_v22 = vld [vmem:[#allocation22_spill] sm:$0xff] }
 0x206   : > { %713 = vst [vmem:[%s2485_s4 + $0x50] sm:$0xf0] %v705_v8  ;;  %714 = vst [vmem:[%s2485_s4 + $0x58] sm:$0xf0] %v706_v5  ;;  %v1062_v24 = vmul.f32 %v2594_v9, %v2327_v25  ;;  %v1063_v29 = vmul.f32 %v2594_v9, %v2898_v12  ;;  %v1064_v42 = vmul.f32 %v2594_v9, %v2349_v49  ;;  %v1221_v8 = vrot.slane %v1220_v47, 4 }
 0x207   : > { %715 = vst [vmem:[%s2485_s4 + $0x60] sm:$0xf0] %v707_v56  ;;  %716 = vst [vmem:[%s2485_s4 + $0x68] sm:$0xf0] %v708_v1  ;;  %v1065_v54 = vmul.f32 %v2594_v9, %v2899_v22  ;;  %v1066_v18 = vmul.f32 %v2594_v9, %v2900_v14  ;;  %v1073_v50 = vmul.f32 %v1071_v43, %v1059_v11 }
 0x208   : > { %717 = vst [vmem:[%s2485_s4 + $0x70] sm:$0xf0] %v709_v35  ;;  %718 = vst [vmem:[%s2485_s4 + $0x78] sm:$0xf0] %v710_v59  ;;  %v1074_v2 = vmul.f32 %v1071_v43, %v1060_v27  ;;  %v1075_v19 = vmul.f32 %v1071_v43, %v1061_v60  ;;  %v1076_v25 = vmul.f32 %v1071_v43, %v1062_v24 }
 0x209   : > { %v1077_v28 = vmul.f32 %v1071_v43, %v1063_v29  ;;  %v1078_v58 = vmul.f32 %v1071_v43, %v1064_v42  ;;  %v1079_v44 = vmul.f32 %v1071_v43, %v1065_v54  ;;  %v1080_v20 = vmul.f32 %v1071_v43, %v1066_v18  ;;  %v1205_v61 = vpop.permute.xlu1 %1204 }
 0x20a   : > { %v1087_v26 = vadd.f32 %v1085_v4, %v1073_v50  ;;  %v1088_v49 = vadd.f32 %v1085_v4, %v1074_v2  ;;  %v1089_v10 = vadd.f32 %v1085_v4, %v1075_v19  ;;  %v1090_v51 = vadd.f32 %v1085_v4, %v1076_v25 }
 0x20b   : > { %v1091_v33 = vadd.f32 %v1085_v4, %v1077_v28  ;;  %v1092_v34 = vadd.f32 %v1085_v4, %v1078_v58  ;;  %v1093_v15 = vadd.f32 %v1085_v4, %v1079_v44  ;;  %v1094_v13 = vadd.f32 %v1085_v4, %v1080_v20 }
 0x20c   : > { %v1095_v9 = vmax.f32 %v1087_v26, 0.0  ;;  %v1096_v6 = vmax.f32 %v1088_v49, 0.0  ;;  %v1097_v7 = vmax.f32 %v1089_v10, 0.0  ;;  %v1098_v23 = vmax.f32 %v1090_v51, 0.0 }
 0x20d   : > { %v1099_v31 = vmax.f32 %v1091_v33, 0.0  ;;  %v1100_v17 = vmax.f32 %v1092_v34, 0.0  ;;  %v1101_v32 = vmax.f32 %v1093_v15, 0.0  ;;  %v1102_v52 = vmax.f32 %v1094_v13, 0.0 }
 0x20e   : > { %1103 = vst [vmem:[%s2485_s4 + $0xc0] sm:$0xf] %v1095_v9  ;;  %1104 = vst [vmem:[%s2485_s4 + $0xc8] sm:$0xf] %v1096_v6  ;;  %v1193_v62 = vmul.f32 %v1418_v53, %v2901_v63  ;;  %v1194_v21 = vmul.f32 %v1418_v53, %v2902_v38  ;;  %v1195_v46 = vmul.f32 %v1418_v53, %v2903_v37  ;;  %v1206_v55 = vrot.slane %v1205_v61, 4 }
 0x20f   : > { %1105 = vst [vmem:[%s2485_s4 + $0xd0] sm:$0xf] %v1097_v7  ;;  %1106 = vst [vmem:[%s2485_s4 + $0xd8] sm:$0xf] %v1098_v23  ;;  %v1196_v0 = vmul.f32 %v1418_v53, %v2904_v48  ;;  %v1197_v3 = vmul.f32 %v1418_v53, %v2399_v40  ;;  %v1198_v36 = vmul.f32 %v1418_v53, %v2410_v45 }
 0x210   : > { %1107 = vst [vmem:[%s2485_s4 + $0xe0] sm:$0xf] %v1099_v31  ;;  %1108 = vst [vmem:[%s2485_s4 + $0xe8] sm:$0xf] %v1100_v17  ;;  %v1199_v57 = vmul.f32 %v1418_v53, %v2421_v30  ;;  %v1200_v41 = vmul.f32 %v1418_v53, %v2428_v16  ;;  %v1208_v5 = vmul.f32 %v1206_v55, %v1193_v62 }
 0x211   : > { %1109 = vst [vmem:[%s2485_s4 + $0xf0] sm:$0xf] %v1101_v32  ;;  %1110 = vst [vmem:[%s2485_s4 + $0xf8] sm:$0xf] %v1102_v52  ;;  %v1209_v56 = vmul.f32 %v1206_v55, %v1194_v21  ;;  %v1210_v1 = vmul.f32 %v1206_v55, %v1195_v46  ;;  %v1211_v35 = vmul.f32 %v1206_v55, %v1196_v0 }
 0x212   : > { %v1212_v59 = vmul.f32 %v1206_v55, %v1197_v3  ;;  %v1213_v11 = vmul.f32 %v1206_v55, %v1198_v36  ;;  %v1214_v27 = vmul.f32 %v1206_v55, %v1199_v57  ;;  %v1215_v40 = vmul.f32 %v1206_v55, %v1200_v41 }
 0x213   : > { %v1223_v45 = vadd.f32 %v1221_v8, %v1208_v5  ;;  %v1224_v39 = vadd.f32 %v1221_v8, %v1209_v56  ;;  %v1225_v60 = vadd.f32 %v1221_v8, %v1210_v1  ;;  %v1226_v24 = vadd.f32 %v1221_v8, %v1211_v35 }
 0x214   : > { %v1227_v30 = vadd.f32 %v1221_v8, %v1212_v59  ;;  %v1228_v16 = vadd.f32 %v1221_v8, %v1213_v11  ;;  %v1229_v12 = vadd.f32 %v1221_v8, %v1214_v27  ;;  %v1230_v29 = vadd.f32 %v1221_v8, %v1215_v40 }
 0x215   : > { %v1231_v42 = vmax.f32 %v1223_v45, 0.0  ;;  %v1232_v43 = vmax.f32 %v1224_v39, 0.0  ;;  %v1233_v4 = vmax.f32 %v1225_v60, 0.0  ;;  %v1234_v22 = vmax.f32 %v1226_v24, 0.0 }
 0x216   : > { %v1235_v54 = vmax.f32 %v1227_v30, 0.0  ;;  %v1236_v14 = vmax.f32 %v1228_v16, 0.0  ;;  %v1237_v18 = vmax.f32 %v1229_v12, 0.0  ;;  %v1238_v50 = vmax.f32 %v1230_v29, 0.0 }
 0x217   : > { %1239 = vst [vmem:[%s2485_s4 + $0xc0] sm:$0xf0] %v1231_v42  ;;  %1240 = vst [vmem:[%s2485_s4 + $0xc8] sm:$0xf0] %v1232_v43 }
 0x218   : > { %1241 = vst [vmem:[%s2485_s4 + $0xd0] sm:$0xf0] %v1233_v4  ;;  %1242 = vst [vmem:[%s2485_s4 + $0xd8] sm:$0xf0] %v1234_v22 }
 0x219   : > { %1243 = vst [vmem:[%s2485_s4 + $0xe0] sm:$0xf0] %v1235_v54  ;;  %1244 = vst [vmem:[%s2485_s4 + $0xe8] sm:$0xf0] %v1236_v14 }
 0x21a   : > { %1245 = vst [vmem:[%s2485_s4 + $0xf0] sm:$0xf0] %v1237_v18  ;;  %1246 = vst [vmem:[%s2485_s4 + $0xf8] sm:$0xf0] %v1238_v50 }
 0x21b   : > { %1460 = shalt.err (!%p1457_p10)
}
 0x21c   : > { %s1461_s26 = scalar_lea.hbm %s2706_s7, 4096  ;;  %s1465_s29 = scalar_lea.hbm %s2762_s3, 8192 }
 0x21d   : > { %p1462_p0 = scmp.ne.s32.totalorder %s2706_s7, %s1461_s26  ;;  %p1466_p1 = scmp.lt.s32.totalorder %s2706_s7, %s2762_s3 }
 0x21e   : > { %p1467_p3 = scmp.lt.s32.totalorder %s1465_s29, %s1461_s26 }
 0x21f   : > { %p1463_p2 = pnand %p1462_p0, %p2905_p12 }
 0x220   : > { %p1468_p6 = por %p1467_p3, %p1466_p1 }
 0x221   : > { %p1464_p9 = pneg %p1463_p2 }
 0x223   : > { %p1469_p11 = pnand %p1468_p6, %p1464_p9 }
 0x225   : > { %1472 = shalt.err (!%p1469_p11)
}
 0x226   : > { %s1518_s11 = smov 1024   ;;  %s1519_s4 = smov 64  }
 0x227   : > { %1352 = dma.vmem_to_hbm [thread:$0]  (%p2905_p12), %s2708_s6, 4096, %s2706_s7, %s1248_s8, %s1518_s11, %s1518_s11, %s1519_s4  }
 0x228 PF: > { %s1276_s9 = sand.u32 1, %s1499_s12   ;;  %p2906_p13 = scmp.ne.s32.totalorder %s2812_s25, 0 }
 0x229   : > { %p2907_p4 = scmp.ge.s32.totalorder %s1511_s15, 2  ;;  %s1277_s16 = scalar_lea.sflag [#allocation4], %s1276_s9 }
 0x22b   : > { %p1359_p5 = pnand %p2907_p4, %p2906_p13 }
 0x22d   : > { %p1360_p7 = pneg %p1359_p5 }
 0x22f   : > { %1494 = dma.done.wait (%p1360_p7), %s1277_s16, 4096  }
 0x230   : > { %1496 = vsyncadd (%p1360_p7), %s1277_s16, 4294963200  ;;  %p16_p8 = scmp.ge.s32.totalorder %s1565_s18, 4   ;;  %s2908_s12 = smov %s1503_s13 }
 0x231   : > { %s2909_s13 = smov %s1507_s14  ;;  %s2910_s14 = smov %s1577_s21 }
 0x232   : > { %s2911_s15 = smov %s1565_s18  ;;  %18 = sbr.rel (!%p16_p8) target bundleno = 5 (0x5), region = 77 }
 0x237   :  { %1282 = vsyncpa [#allocation3], 1 }
 0x238   :  { %1284 = vsyncpa [#allocation3 + $0x1], 1 }
 0x239   :  { %1285 = vsyncpa [#allocation4], 1 }
 0x23a   :  { %1287 = vsyncpa [#allocation4 + $0x1], 1 }

</bundles_post_ra>
